<compile_context>
chip_gen: v7x
topology: tpu7x:2x2x1
jax: 0.10.0
libtpu: 0.0.40
codegen_flags: <defaults>
</compile_context>

<pallas_src>
import math
import numpy as np
import jax
import jax.numpy as jnp
from jax.experimental import pallas as pl
from jax.experimental.pallas import tpu as pltpu  # noqa: F401  (TPU-specific knobs)


# ------------------------------------------------------------------ kernel ---
def make_decoder_kernel(num_layers, k_nz, n_nodes, bd_out):
    """Builds the fused decoder kernel.

    Ref layout (all VMEM, single invocation, no grid):
      refs[0] : x         (N, B*Din0)         node-major, batch folded into lanes
      refs[1] : h0        (L, N, B*Dout)      stacked init states, same folding
      refs[2] : sup_stack (K_nz*N, N)         non-identity Chebyshev terms,
                                              row-stacked for one-shot hops
      refs[3 + 10*l ...] per layer l (10 tensors):
          wgx_id (B*Din_l, 2*B*Dout)       wgh_id (B*Dout, 2*B*Dout)
          wgx_nz (K_nz, B*Din_l, 2*B*Dout) wgh_nz (K_nz, B*Dout, 2*B*Dout)
          bg     (1, 2*B*Dout)
          wux_id (B*Din_l, B*Dout)         wuh_id (B*Dout, B*Dout)
          wux_nz (K_nz, B*Din_l, B*Dout)   wuh_nz (K_nz, B*Dout, B*Dout)
          bu     (1, B*Dout)
      last ref : h_out    (N, L*B*Dout)       lane-dense output slab
    """
    def kernel(*refs):
        x_ref, h0_ref, sup_ref = refs[0], refs[1], refs[2]
        w_refs = refs[3:3 + 10 * num_layers]
        h_out_ref = refs[3 + 10 * num_layers]

        sup_stack = sup_ref[...]                            # (K_nz*N, N)

        def rows(a, k):                                     # k-th N-row block
            return a[k * n_nodes:(k + 1) * n_nodes, :]

        cur = x_ref[...]                                    # (N, B*Din0)
        layer_out = []
        for l in range(num_layers):
            (wgx_id, wgh_id, wgx_nz, wgh_nz, bg,
             wux_id, wuh_id, wux_nz, wuh_nz, bu) = w_refs[10 * l:10 * (l + 1)]
            h = h0_ref[l]                                   # (N, B*Dout)

            # All K_nz graph hops in ONE matmul per operand; sx reused by gate
            # AND candidate AGCN.
            sx_all = jnp.dot(sup_stack, cur,
                             preferred_element_type=jnp.float32)   # (K*N, B*Din)
            sh_all = jnp.dot(sup_stack, h,
                             preferred_element_type=jnp.float32)   # (K*N, B*Dout)

            # ---- gate AGCN: concat_k(S_k @ [x,h]) @ Wg + bg rewritten as
            #      sum_k ((S_k@x) @ Wg_x_k + (S_k@h) @ Wg_h_k)  (no concats) ----
            acc_g = (jnp.dot(cur, wgx_id[...], preferred_element_type=jnp.float32)
                     + jnp.dot(h, wgh_id[...], preferred_element_type=jnp.float32)
                     + bg[...])
            for k in range(k_nz):
                acc_g = (acc_g
                         + jnp.dot(rows(sx_all, k), wgx_nz[k],
                                   preferred_element_type=jnp.float32)
                         + jnp.dot(rows(sh_all, k), wgh_nz[k],
                                   preferred_element_type=jnp.float32))
            zr = jax.nn.sigmoid(acc_g)                      # (N, 2*B*Dout): [z | r]
            z = zr[:, :bd_out]
            r = zr[:, bd_out:]

            # ---- candidate AGCN on [x, z*h] ----
            zh = z * h
            szh_all = jnp.dot(sup_stack, zh,
                              preferred_element_type=jnp.float32)  # (K*N, B*Dout)
            acc_u = (jnp.dot(cur, wux_id[...], preferred_element_type=jnp.float32)
                     + jnp.dot(zh, wuh_id[...], preferred_element_type=jnp.float32)
                     + bu[...])
            for k in range(k_nz):
                acc_u = (acc_u
                         + jnp.dot(rows(sx_all, k), wux_nz[k],
                                   preferred_element_type=jnp.float32)
                         + jnp.dot(rows(szh_all, k), wuh_nz[k],
                                   preferred_element_type=jnp.float32))
            hc = jnp.tanh(acc_u)                            # (N, B*Dout)

            # ---- GRU-style mix ----
            h_new = r * h + (1.0 - r) * hc
            layer_out.append(h_new)
            cur = h_new

        # single lane-dense store of the whole output slab
        h_out_ref[...] = (layer_out[0] if num_layers == 1
                          else jnp.concatenate(layer_out, axis=1))

    return kernel


# ----------------------------------------------------- wrapper-side helpers --
def build_support_set_nz(supports, cheb_k):
    """Chebyshev expansion WITHOUT the identity (T_0) terms.
    Per support -> [S, T_2, ..., T_{cheb_k-1}], stacked over supports."""
    assert cheb_k >= 2, "cheb_k >= 2 expected (identity folding)"
    sset = []
    for S in supports:
        ks = [jnp.eye(S.shape[0], dtype=S.dtype), S]
        for _ in range(2, cheb_k):
            ks.append(2.0 * S @ ks[-1] - ks[-2])
        sset.extend(ks[1:])                        # drop T_0 = I
    return jnp.stack(sset, axis=0)                 # (num_supports*(cheb_k-1), N, N)


def prepare_layer_weights(p, din, dout, cheb_k, num_supports, batch,
                          compute_dtype=jnp.float32):
    """Split wg/wu into per-(support, x|h) row blocks, fold the identity (T_0)
    terms into dedicated 'id' blocks, and block-diagonalise over batch so the
    whole batch rides in the matmul lanes.  Gate output columns are reordered
    to [z for all b | r for all b] so z/r split as static, batch-layout
    compatible slices inside the kernel."""
    K = num_supports * cheb_k
    cin = din + dout
    wg, bg, wu, bu = p["wg"], p["bg"], p["wu"], p["bu"]

    def split_k(w):
        blocks = []
        for k in range(K):
            wk = w[k * cin:(k + 1) * cin]
            blocks.append((wk[:din], wk[din:]))    # (x rows, h rows)
        return blocks

    gate_blocks = split_k(wg)                      # cout = 2*dout
    upd_blocks = split_k(wu)                       # cout = dout

    id_idx = [s * cheb_k for s in range(num_supports)]
    nz_idx = [s * cheb_k + j for s in range(num_supports)
              for j in range(1, cheb_k)]

    eye_b = jnp.eye(batch, dtype=jnp.float32)
    bdiag = lambda w: jnp.kron(eye_b, w)

    def bdiag_gate(w):
        wz, wr = w[:, :dout], w[:, dout:]
        return jnp.concatenate([jnp.kron(eye_b, wz), jnp.kron(eye_b, wr)], axis=1)

    wgx_id = bdiag_gate(sum(gate_blocks[k][0] for k in id_idx))
    wgh_id = bdiag_gate(sum(gate_blocks[k][1] for k in id_idx))
    wgx_nz = jnp.stack([bdiag_gate(gate_blocks[k][0]) for k in nz_idx])
    wgh_nz = jnp.stack([bdiag_gate(gate_blocks[k][1]) for k in nz_idx])
    bg_b = jnp.concatenate([jnp.tile(bg[:, :dout], (1, batch)),
                            jnp.tile(bg[:, dout:], (1, batch))], axis=1)

    wux_id = bdiag(sum(upd_blocks[k][0] for k in id_idx))
    wuh_id = bdiag(sum(upd_blocks[k][1] for k in id_idx))
    wux_nz = jnp.stack([bdiag(upd_blocks[k][0]) for k in nz_idx])
    wuh_nz = jnp.stack([bdiag(upd_blocks[k][1]) for k in nz_idx])
    bu_b = jnp.tile(bu, (1, batch))

    cast = lambda a: a.astype(compute_dtype)
    return [cast(wgx_id), cast(wgh_id), cast(wgx_nz), cast(wgh_nz),
            bg_b.astype(jnp.float32),
            cast(wux_id), cast(wuh_id), cast(wux_nz), cast(wuh_nz),
            bu_b.astype(jnp.float32)]


def _cost_estimate(N, B, dout, dins, k_nz, inputs, out_bytes):
    flops = 0
    trans = 0
    for din in dins:
        bd_in = B * din
        bd_h = B * dout
        flops += 2 * N * N * k_nz * (bd_in + 2 * bd_h)               # S_stack matmuls
        flops += (k_nz + 1) * 2 * N * (bd_in + bd_h) * (2 * bd_h)    # gate weights
        flops += (k_nz + 1) * 2 * N * (bd_in + bd_h) * bd_h          # update weights
        flops += 6 * N * bd_h                                        # GRU mix
        trans += 3 * N * bd_h                                        # sigmoid + tanh
    bytes_accessed = out_bytes + sum(
        int(np.prod(a.shape)) * a.dtype.itemsize for a in inputs)
    return pl.CostEstimate(flops=int(flops), transcendentals=int(trans),
                           bytes_accessed=int(bytes_accessed))


# ------------------------------------------------------------ fused forward --
def adcrnn_decoder_forward(xt, init_state, supports, cheb_k, params,
                           num_supports=2, compute_dtype=jnp.float32):
    """xt: (B,N,dim_in), init_state: list of (B,N,dim_out), supports: list (N,N).
    Runs the whole ADCRNN_Decoder forward in a single pallas_call."""
    B, N, din0 = xt.shape
    dout = init_state[0].shape[-1]
    L = len(params)
    bd_out = B * dout

    sup_nz = build_support_set_nz(supports, cheb_k).astype(compute_dtype)
    k_nz = int(sup_nz.shape[0])
    sup_stack = sup_nz.reshape(k_nz * N, N)          # row-stacked hop matrix

    # node-major layout with batch folded into lanes: (B,N,C) -> (N, B*C)
    fold = lambda a: jnp.transpose(a, (1, 0, 2)).reshape(N, -1)
    x_nb = fold(xt).astype(compute_dtype)
    h0 = jnp.stack([fold(h).astype(jnp.float32) for h in init_state], axis=0)

    flat_w = []
    dins = []
    for l, p in enumerate(params):
        din = din0 if l == 0 else dout
        dins.append(din)
        flat_w += prepare_layer_weights(p, din, dout, cheb_k, num_supports, B,
                                        compute_dtype)

    inputs = [x_nb, h0, sup_stack] + flat_w
    out_shape = jax.ShapeDtypeStruct((N, L * bd_out), jnp.float32)
    cost = _cost_estimate(N, B, dout, dins, k_nz, inputs,
                          int(np.prod(out_shape.shape)) * 4)

    h_all = pl.pallas_call(
        make_decoder_kernel(L, k_nz, N, bd_out),
        out_shape=out_shape,
        cost_estimate=cost,
    )(*inputs)

    # (N, L*B*Dout) -> per-layer (B, N, Dout)
    h_all = h_all.reshape(N, L, B, dout)
    output_hidden = [jnp.transpose(h_all[:, l], (1, 0, 2)) for l in range(L)]
    return output_hidden[-1], output_hidden


# ------------------------------------------------------ parameter creation ---
def xavier_normal(key, shape):
    fan_in, fan_out = shape
    std = math.sqrt(2.0 / (fan_in + fan_out))
    return jax.random.normal(key, shape, dtype=jnp.float32) * std


def make_decoder_params(key, node_num, dim_in, dim_out, cheb_k, num_layers,
                        num_supports=2):
    params = []
    for layer in range(num_layers):
        din = dim_in if layer == 0 else dim_out
        key, kg, ku = jax.random.split(key, 3)
        big_in = num_supports * cheb_k * (din + dim_out)
        params.append({
            "wg": xavier_normal(kg, (big_in, 2 * dim_out)),
            "bg": jnp.zeros((1, 2 * dim_out), jnp.float32),
            "wu": xavier_normal(ku, (big_in, dim_out)),
            "bu": jnp.zeros((1, dim_out), jnp.float32),
        })
    return params


# ------------------------------------------------------ pure-JAX reference ---
def build_support_set_full(supports, cheb_k):
    """Original AGCN expansion (with identities): per support [I, S, T2, ...]."""
    sset = []
    for S in supports:
        ks = [jnp.eye(S.shape[0], dtype=S.dtype), S]
        for _ in range(2, cheb_k):
            ks.append(2.0 * S @ ks[-1] - ks[-2])
        sset.extend(ks)
    return jnp.stack(sset, axis=0)


def _agcn_ref(x, support_set, w, b):
    xg = jnp.concatenate(
        [jnp.einsum("nm,bmc->bnc", support_set[k], x)
         for k in range(support_set.shape[0])], axis=-1)
    return jnp.einsum("bni,io->bno", xg, w) + b


def _cell_ref(x, state, support_set, p):
    dout = state.shape[-1]
    zr = jax.nn.sigmoid(_agcn_ref(jnp.concatenate([x, state], -1),
                                  support_set, p["wg"], p["bg"]))
    z, r = zr[..., :dout], zr[..., dout:]
    hc = jnp.tanh(_agcn_ref(jnp.concatenate([x, z * state], -1),
                            support_set, p["wu"], p["bu"]))
    return r * state + (1.0 - r) * hc


def decoder_ref(xt, init_state, supports, cheb_k, params):
    sset = build_support_set_full(supports, cheb_k)
    cur = xt
    hid = []
    for i, p in enumerate(params):
        cur = _cell_ref(cur, init_state[i], sset, p)
        hid.append(cur)
    return cur, hid


# --------------------------------------------------------------------- main --
if __name__ == "__main__":
    B, N = 2, 16          # batch, node_num
    DIM_IN, DIM_OUT = 4, 32
    CHEB_K, NUM_LAYERS = 3, 2
    NUM_SUPPORTS = 2      # AGCN weight shape (2*cheb_k*dim_in, dim_out) assumes 2

    key = jax.random.PRNGKey(0)
    key, kx, ks0, ks1, ka, kp = jax.random.split(key, 6)

    xt = jax.random.normal(kx, (B, N, DIM_IN), dtype=jnp.float32)
    init_state = [
        jax.random.normal(ks0, (B, N, DIM_OUT), dtype=jnp.float32),
        jax.random.normal(ks1, (B, N, DIM_OUT), dtype=jnp.float32),
    ]
    # two row-stochastic random supports (like learned adaptive adjacencies)
    raw = jax.random.normal(ka, (NUM_SUPPORTS, N, N), dtype=jnp.float32)
    supports = [jax.nn.softmax(raw[i], axis=-1) for i in range(NUM_SUPPORTS)]

    params = make_decoder_params(kp, N, DIM_IN, DIM_OUT, CHEB_K, NUM_LAYERS,
                                 NUM_SUPPORTS)

    # f32 end-to-end for the correctness check; pass compute_dtype=jnp.bfloat16
    # on v6e/v7x for the bf16-MXU / half-DMA variant.
    out, output_hidden = adcrnn_decoder_forward(xt, init_state, supports,
                                                CHEB_K, params,
                                                num_supports=NUM_SUPPORTS,
                                                compute_dtype=jnp.float32)
    out = jax.block_until_ready(out)
    output_hidden = [jax.block_until_ready(h) for h in output_hidden]

    # correctness check vs pure-JAX reference of the PyTorch semantics
    out_ref, hid_ref = decoder_ref(xt, init_state, supports, CHEB_K, params)
    np.testing.assert_allclose(np.asarray(out), np.asarray(out_ref),
                               rtol=1e-4, atol=1e-4)
    for a, b in zip(output_hidden, hid_ref):
        np.testing.assert_allclose(np.asarray(a), np.asarray(b),
                                   rtol=1e-4, atol=1e-4)

    assert out.shape == (B, N, DIM_OUT)
    assert len(output_hidden) == NUM_LAYERS

    print("KERNEL_OK")
</pallas_src>

<mosaic_0001>
module attributes {stable_mosaic.version = 11 : i64} {
  func.func @kernel(%arg0: memref<16x8xf32, #tpu.memory_space<vmem>>, %arg1: memref<2x16x64xf32, #tpu.memory_space<vmem>>, %arg2: memref<64x16xf32, #tpu.memory_space<vmem>>, %arg3: memref<8x128xf32, #tpu.memory_space<vmem>>, %arg4: memref<64x128xf32, #tpu.memory_space<vmem>>, %arg5: memref<4x8x128xf32, #tpu.memory_space<vmem>>, %arg6: memref<4x64x128xf32, #tpu.memory_space<vmem>>, %arg7: memref<1x128xf32, #tpu.memory_space<vmem>>, %arg8: memref<8x64xf32, #tpu.memory_space<vmem>>, %arg9: memref<64x64xf32, #tpu.memory_space<vmem>>, %arg10: memref<4x8x64xf32, #tpu.memory_space<vmem>>, %arg11: memref<4x64x64xf32, #tpu.memory_space<vmem>>, %arg12: memref<1x64xf32, #tpu.memory_space<vmem>>, %arg13: memref<64x128xf32, #tpu.memory_space<vmem>>, %arg14: memref<64x128xf32, #tpu.memory_space<vmem>>, %arg15: memref<4x64x128xf32, #tpu.memory_space<vmem>>, %arg16: memref<4x64x128xf32, #tpu.memory_space<vmem>>, %arg17: memref<1x128xf32, #tpu.memory_space<vmem>>, %arg18: memref<64x64xf32, #tpu.memory_space<vmem>>, %arg19: memref<64x64xf32, #tpu.memory_space<vmem>>, %arg20: memref<4x64x64xf32, #tpu.memory_space<vmem>>, %arg21: memref<4x64x64xf32, #tpu.memory_space<vmem>>, %arg22: memref<1x64xf32, #tpu.memory_space<vmem>>, %arg23: memref<16x128xf32, #tpu.memory_space<vmem>>) attributes {dimension_semantics = [], scalar_prefetch = 0 : i64, scratch_operands = 0 : i64, tpu.core_type = #tpu.core_type<tc>} {
    %c0 = arith.constant 0 : index
    %c0_0 = arith.constant 0 : index
    %0 = vector.load %arg2[%c0, %c0_0] : memref<64x16xf32, #tpu.memory_space<vmem>>, vector<64x16xf32>
    %c0_1 = arith.constant 0 : index
    %c0_2 = arith.constant 0 : index
    %1 = vector.load %arg0[%c0_1, %c0_2] : memref<16x8xf32, #tpu.memory_space<vmem>>, vector<16x8xf32>
    %c0_3 = arith.constant 0 : index
    %c0_4 = arith.constant 0 : index
    %c0_5 = arith.constant 0 : index
    %2 = vector.load %arg1[%c0_3, %c0_4, %c0_5] : memref<2x16x64xf32, #tpu.memory_space<vmem>>, vector<1x16x64xf32>
    %3 = vector.shape_cast %2 : vector<1x16x64xf32> to vector<16x64xf32>
    %cst = arith.constant dense<0.000000e+00> : vector<64x8xf32>
    %4 = tpu.matmul %0, %1, %cst {dimension_numbers = #tpu.dot_dimension_numbers<[1], [0], [0], [1], [0, 0, 1, 1], [], []>} : vector<64x16xf32>, vector<16x8xf32>, vector<64x8xf32> -> vector<64x8xf32>
    %cst_6 = arith.constant dense<0.000000e+00> : vector<64x64xf32>
    %5 = tpu.matmul %0, %3, %cst_6 {dimension_numbers = #tpu.dot_dimension_numbers<[1], [0], [0], [1], [0, 0, 1, 1], [], []>} : vector<64x16xf32>, vector<16x64xf32>, vector<64x64xf32> -> vector<64x64xf32>
    %c0_7 = arith.constant 0 : index
    %c0_8 = arith.constant 0 : index
    %6 = vector.load %arg3[%c0_7, %c0_8] : memref<8x128xf32, #tpu.memory_space<vmem>>, vector<8x128xf32>
    %cst_9 = arith.constant dense<0.000000e+00> : vector<16x128xf32>
    %7 = tpu.matmul %1, %6, %cst_9 {dimension_numbers = #tpu.dot_dimension_numbers<[1], [0], [0], [1], [0, 0, 1, 1], [], []>} : vector<16x8xf32>, vector<8x128xf32>, vector<16x128xf32> -> vector<16x128xf32>
    %c0_10 = arith.constant 0 : index
    %c0_11 = arith.constant 0 : index
    %8 = vector.load %arg4[%c0_10, %c0_11] : memref<64x128xf32, #tpu.memory_space<vmem>>, vector<64x128xf32>
    %cst_12 = arith.constant dense<0.000000e+00> : vector<16x128xf32>
    %9 = tpu.matmul %3, %8, %cst_12 {dimension_numbers = #tpu.dot_dimension_numbers<[1], [0], [0], [1], [0, 0, 1, 1], [], []>} : vector<16x64xf32>, vector<64x128xf32>, vector<16x128xf32> -> vector<16x128xf32>
    %10 = arith.addf %7, %9 : vector<16x128xf32>
    %c0_13 = arith.constant 0 : index
    %c0_14 = arith.constant 0 : index
    %11 = vector.load %arg7[%c0_13, %c0_14] : memref<1x128xf32, #tpu.memory_space<vmem>>, vector<1x128xf32>
    %12 = vector.broadcast %11 : vector<1x128xf32> to vector<16x128xf32>
    %13 = arith.addf %10, %12 : vector<16x128xf32>
    %14 = vector.extract_strided_slice %4 {offsets = [0, 0], sizes = [16, 8], strides = [1, 1]} : vector<64x8xf32> to vector<16x8xf32>
    %c0_15 = arith.constant 0 : index
    %c0_16 = arith.constant 0 : index
    %c0_17 = arith.constant 0 : index
    %15 = vector.load %arg5[%c0_15, %c0_16, %c0_17] : memref<4x8x128xf32, #tpu.memory_space<vmem>>, vector<1x8x128xf32>
    %16 = vector.shape_cast %15 : vector<1x8x128xf32> to vector<8x128xf32>
    %cst_18 = arith.constant dense<0.000000e+00> : vector<16x128xf32>
    %17 = tpu.matmul %14, %16, %cst_18 {dimension_numbers = #tpu.dot_dimension_numbers<[1], [0], [0], [1], [0, 0, 1, 1], [], []>} : vector<16x8xf32>, vector<8x128xf32>, vector<16x128xf32> -> vector<16x128xf32>
    %18 = arith.addf %13, %17 : vector<16x128xf32>
    %19 = vector.extract_strided_slice %5 {offsets = [0, 0], sizes = [16, 64], strides = [1, 1]} : vector<64x64xf32> to vector<16x64xf32>
    %c0_19 = arith.constant 0 : index
    %c0_20 = arith.constant 0 : index
    %c0_21 = arith.constant 0 : index
    %20 = vector.load %arg6[%c0_19, %c0_20, %c0_21] : memref<4x64x128xf32, #tpu.memory_space<vmem>>, vector<1x64x128xf32>
    %21 = vector.shape_cast %20 : vector<1x64x128xf32> to vector<64x128xf32>
    %cst_22 = arith.constant dense<0.000000e+00> : vector<16x128xf32>
    %22 = tpu.matmul %19, %21, %cst_22 {dimension_numbers = #tpu.dot_dimension_numbers<[1], [0], [0], [1], [0, 0, 1, 1], [], []>} : vector<16x64xf32>, vector<64x128xf32>, vector<16x128xf32> -> vector<16x128xf32>
    %23 = arith.addf %18, %22 : vector<16x128xf32>
    %24 = vector.extract_strided_slice %4 {offsets = [16, 0], sizes = [16, 8], strides = [1, 1]} : vector<64x8xf32> to vector<16x8xf32>
    %c1 = arith.constant 1 : index
    %c0_23 = arith.constant 0 : index
    %c0_24 = arith.constant 0 : index
    %25 = vector.load %arg5[%c1, %c0_23, %c0_24] : memref<4x8x128xf32, #tpu.memory_space<vmem>>, vector<1x8x128xf32>
    %26 = vector.shape_cast %25 : vector<1x8x128xf32> to vector<8x128xf32>
    %cst_25 = arith.constant dense<0.000000e+00> : vector<16x128xf32>
    %27 = tpu.matmul %24, %26, %cst_25 {dimension_numbers = #tpu.dot_dimension_numbers<[1], [0], [0], [1], [0, 0, 1, 1], [], []>} : vector<16x8xf32>, vector<8x128xf32>, vector<16x128xf32> -> vector<16x128xf32>
    %28 = arith.addf %23, %27 : vector<16x128xf32>
    %29 = vector.extract_strided_slice %5 {offsets = [16, 0], sizes = [16, 64], strides = [1, 1]} : vector<64x64xf32> to vector<16x64xf32>
    %c1_26 = arith.constant 1 : index
    %c0_27 = arith.constant 0 : index
    %c0_28 = arith.constant 0 : index
    %30 = vector.load %arg6[%c1_26, %c0_27, %c0_28] : memref<4x64x128xf32, #tpu.memory_space<vmem>>, vector<1x64x128xf32>
    %31 = vector.shape_cast %30 : vector<1x64x128xf32> to vector<64x128xf32>
    %cst_29 = arith.constant dense<0.000000e+00> : vector<16x128xf32>
    %32 = tpu.matmul %29, %31, %cst_29 {dimension_numbers = #tpu.dot_dimension_numbers<[1], [0], [0], [1], [0, 0, 1, 1], [], []>} : vector<16x64xf32>, vector<64x128xf32>, vector<16x128xf32> -> vector<16x128xf32>
    %33 = arith.addf %28, %32 : vector<16x128xf32>
    %34 = vector.extract_strided_slice %4 {offsets = [32, 0], sizes = [16, 8], strides = [1, 1]} : vector<64x8xf32> to vector<16x8xf32>
    %c2 = arith.constant 2 : index
    %c0_30 = arith.constant 0 : index
    %c0_31 = arith.constant 0 : index
    %35 = vector.load %arg5[%c2, %c0_30, %c0_31] : memref<4x8x128xf32, #tpu.memory_space<vmem>>, vector<1x8x128xf32>
    %36 = vector.shape_cast %35 : vector<1x8x128xf32> to vector<8x128xf32>
    %cst_32 = arith.constant dense<0.000000e+00> : vector<16x128xf32>
    %37 = tpu.matmul %34, %36, %cst_32 {dimension_numbers = #tpu.dot_dimension_numbers<[1], [0], [0], [1], [0, 0, 1, 1], [], []>} : vector<16x8xf32>, vector<8x128xf32>, vector<16x128xf32> -> vector<16x128xf32>
    %38 = arith.addf %33, %37 : vector<16x128xf32>
    %39 = vector.extract_strided_slice %5 {offsets = [32, 0], sizes = [16, 64], strides = [1, 1]} : vector<64x64xf32> to vector<16x64xf32>
    %c2_33 = arith.constant 2 : index
    %c0_34 = arith.constant 0 : index
    %c0_35 = arith.constant 0 : index
    %40 = vector.load %arg6[%c2_33, %c0_34, %c0_35] : memref<4x64x128xf32, #tpu.memory_space<vmem>>, vector<1x64x128xf32>
    %41 = vector.shape_cast %40 : vector<1x64x128xf32> to vector<64x128xf32>
    %cst_36 = arith.constant dense<0.000000e+00> : vector<16x128xf32>
    %42 = tpu.matmul %39, %41, %cst_36 {dimension_numbers = #tpu.dot_dimension_numbers<[1], [0], [0], [1], [0, 0, 1, 1], [], []>} : vector<16x64xf32>, vector<64x128xf32>, vector<16x128xf32> -> vector<16x128xf32>
    %43 = arith.addf %38, %42 : vector<16x128xf32>
    %44 = vector.extract_strided_slice %4 {offsets = [48, 0], sizes = [16, 8], strides = [1, 1]} : vector<64x8xf32> to vector<16x8xf32>
    %c3 = arith.constant 3 : index
    %c0_37 = arith.constant 0 : index
    %c0_38 = arith.constant 0 : index
    %45 = vector.load %arg5[%c3, %c0_37, %c0_38] : memref<4x8x128xf32, #tpu.memory_space<vmem>>, vector<1x8x128xf32>
    %46 = vector.shape_cast %45 : vector<1x8x128xf32> to vector<8x128xf32>
    %cst_39 = arith.constant dense<0.000000e+00> : vector<16x128xf32>
    %47 = tpu.matmul %44, %46, %cst_39 {dimension_numbers = #tpu.dot_dimension_numbers<[1], [0], [0], [1], [0, 0, 1, 1], [], []>} : vector<16x8xf32>, vector<8x128xf32>, vector<16x128xf32> -> vector<16x128xf32>
    %48 = arith.addf %43, %47 : vector<16x128xf32>
    %49 = vector.extract_strided_slice %5 {offsets = [48, 0], sizes = [16, 64], strides = [1, 1]} : vector<64x64xf32> to vector<16x64xf32>
    %c3_40 = arith.constant 3 : index
    %c0_41 = arith.constant 0 : index
    %c0_42 = arith.constant 0 : index
    %50 = vector.load %arg6[%c3_40, %c0_41, %c0_42] : memref<4x64x128xf32, #tpu.memory_space<vmem>>, vector<1x64x128xf32>
    %51 = vector.shape_cast %50 : vector<1x64x128xf32> to vector<64x128xf32>
    %cst_43 = arith.constant dense<0.000000e+00> : vector<16x128xf32>
    %52 = tpu.matmul %49, %51, %cst_43 {dimension_numbers = #tpu.dot_dimension_numbers<[1], [0], [0], [1], [0, 0, 1, 1], [], []>} : vector<16x64xf32>, vector<64x128xf32>, vector<16x128xf32> -> vector<16x128xf32>
    %53 = arith.addf %48, %52 : vector<16x128xf32>
    %54 = arith.negf %53 : vector<16x128xf32>
    %55 = math.exp %54 : vector<16x128xf32>
    %cst_44 = arith.constant 1.000000e+00 : f32
    %56 = vector.broadcast %cst_44 : f32 to vector<16x128xf32>
    %57 = arith.addf %56, %55 : vector<16x128xf32>
    %58 = arith.divf %56, %57 : vector<16x128xf32>
    %59 = vector.extract_strided_slice %58 {offsets = [0, 0], sizes = [16, 64], strides = [1, 1]} : vector<16x128xf32> to vector<16x64xf32>
    %60 = vector.extract_strided_slice %58 {offsets = [0, 64], sizes = [16, 64], strides = [1, 1]} : vector<16x128xf32> to vector<16x64xf32>
    %61 = arith.mulf %59, %3 : vector<16x64xf32>
    %cst_45 = arith.constant dense<0.000000e+00> : vector<64x64xf32>
    %62 = tpu.matmul %0, %61, %cst_45 {dimension_numbers = #tpu.dot_dimension_numbers<[1], [0], [0], [1], [0, 0, 1, 1], [], []>} : vector<64x16xf32>, vector<16x64xf32>, vector<64x64xf32> -> vector<64x64xf32>
    %c0_46 = arith.constant 0 : index
    %c0_47 = arith.constant 0 : index
    %63 = vector.load %arg8[%c0_46, %c0_47] : memref<8x64xf32, #tpu.memory_space<vmem>>, vector<8x64xf32>
    %cst_48 = arith.constant dense<0.000000e+00> : vector<16x64xf32>
    %64 = tpu.matmul %1, %63, %cst_48 {dimension_numbers = #tpu.dot_dimension_numbers<[1], [0], [0], [1], [0, 0, 1, 1], [], []>} : vector<16x8xf32>, vector<8x64xf32>, vector<16x64xf32> -> vector<16x64xf32>
    %c0_49 = arith.constant 0 : index
    %c0_50 = arith.constant 0 : index
    %65 = vector.load %arg9[%c0_49, %c0_50] : memref<64x64xf32, #tpu.memory_space<vmem>>, vector<64x64xf32>
    %cst_51 = arith.constant dense<0.000000e+00> : vector<16x64xf32>
    %66 = tpu.matmul %61, %65, %cst_51 {dimension_numbers = #tpu.dot_dimension_numbers<[1], [0], [0], [1], [0, 0, 1, 1], [], []>} : vector<16x64xf32>, vector<64x64xf32>, vector<16x64xf32> -> vector<16x64xf32>
    %67 = arith.addf %64, %66 : vector<16x64xf32>
    %c0_52 = arith.constant 0 : index
    %c0_53 = arith.constant 0 : index
    %68 = vector.load %arg12[%c0_52, %c0_53] : memref<1x64xf32, #tpu.memory_space<vmem>>, vector<1x64xf32>
    %69 = vector.broadcast %68 : vector<1x64xf32> to vector<16x64xf32>
    %70 = arith.addf %67, %69 : vector<16x64xf32>
    %71 = vector.extract_strided_slice %4 {offsets = [0, 0], sizes = [16, 8], strides = [1, 1]} : vector<64x8xf32> to vector<16x8xf32>
    %c0_54 = arith.constant 0 : index
    %c0_55 = arith.constant 0 : index
    %c0_56 = arith.constant 0 : index
    %72 = vector.load %arg10[%c0_54, %c0_55, %c0_56] : memref<4x8x64xf32, #tpu.memory_space<vmem>>, vector<1x8x64xf32>
    %73 = vector.shape_cast %72 : vector<1x8x64xf32> to vector<8x64xf32>
    %cst_57 = arith.constant dense<0.000000e+00> : vector<16x64xf32>
    %74 = tpu.matmul %71, %73, %cst_57 {dimension_numbers = #tpu.dot_dimension_numbers<[1], [0], [0], [1], [0, 0, 1, 1], [], []>} : vector<16x8xf32>, vector<8x64xf32>, vector<16x64xf32> -> vector<16x64xf32>
    %75 = arith.addf %70, %74 : vector<16x64xf32>
    %76 = vector.extract_strided_slice %62 {offsets = [0, 0], sizes = [16, 64], strides = [1, 1]} : vector<64x64xf32> to vector<16x64xf32>
    %c0_58 = arith.constant 0 : index
    %c0_59 = arith.constant 0 : index
    %c0_60 = arith.constant 0 : index
    %77 = vector.load %arg11[%c0_58, %c0_59, %c0_60] : memref<4x64x64xf32, #tpu.memory_space<vmem>>, vector<1x64x64xf32>
    %78 = vector.shape_cast %77 : vector<1x64x64xf32> to vector<64x64xf32>
    %cst_61 = arith.constant dense<0.000000e+00> : vector<16x64xf32>
    %79 = tpu.matmul %76, %78, %cst_61 {dimension_numbers = #tpu.dot_dimension_numbers<[1], [0], [0], [1], [0, 0, 1, 1], [], []>} : vector<16x64xf32>, vector<64x64xf32>, vector<16x64xf32> -> vector<16x64xf32>
    %80 = arith.addf %75, %79 : vector<16x64xf32>
    %81 = vector.extract_strided_slice %4 {offsets = [16, 0], sizes = [16, 8], strides = [1, 1]} : vector<64x8xf32> to vector<16x8xf32>
    %c1_62 = arith.constant 1 : index
    %c0_63 = arith.constant 0 : index
    %c0_64 = arith.constant 0 : index
    %82 = vector.load %arg10[%c1_62, %c0_63, %c0_64] : memref<4x8x64xf32, #tpu.memory_space<vmem>>, vector<1x8x64xf32>
    %83 = vector.shape_cast %82 : vector<1x8x64xf32> to vector<8x64xf32>
    %cst_65 = arith.constant dense<0.000000e+00> : vector<16x64xf32>
    %84 = tpu.matmul %81, %83, %cst_65 {dimension_numbers = #tpu.dot_dimension_numbers<[1], [0], [0], [1], [0, 0, 1, 1], [], []>} : vector<16x8xf32>, vector<8x64xf32>, vector<16x64xf32> -> vector<16x64xf32>
    %85 = arith.addf %80, %84 : vector<16x64xf32>
    %86 = vector.extract_strided_slice %62 {offsets = [16, 0], sizes = [16, 64], strides = [1, 1]} : vector<64x64xf32> to vector<16x64xf32>
    %c1_66 = arith.constant 1 : index
    %c0_67 = arith.constant 0 : index
    %c0_68 = arith.constant 0 : index
    %87 = vector.load %arg11[%c1_66, %c0_67, %c0_68] : memref<4x64x64xf32, #tpu.memory_space<vmem>>, vector<1x64x64xf32>
    %88 = vector.shape_cast %87 : vector<1x64x64xf32> to vector<64x64xf32>
    %cst_69 = arith.constant dense<0.000000e+00> : vector<16x64xf32>
    %89 = tpu.matmul %86, %88, %cst_69 {dimension_numbers = #tpu.dot_dimension_numbers<[1], [0], [0], [1], [0, 0, 1, 1], [], []>} : vector<16x64xf32>, vector<64x64xf32>, vector<16x64xf32> -> vector<16x64xf32>
    %90 = arith.addf %85, %89 : vector<16x64xf32>
    %91 = vector.extract_strided_slice %4 {offsets = [32, 0], sizes = [16, 8], strides = [1, 1]} : vector<64x8xf32> to vector<16x8xf32>
    %c2_70 = arith.constant 2 : index
    %c0_71 = arith.constant 0 : index
    %c0_72 = arith.constant 0 : index
    %92 = vector.load %arg10[%c2_70, %c0_71, %c0_72] : memref<4x8x64xf32, #tpu.memory_space<vmem>>, vector<1x8x64xf32>
    %93 = vector.shape_cast %92 : vector<1x8x64xf32> to vector<8x64xf32>
    %cst_73 = arith.constant dense<0.000000e+00> : vector<16x64xf32>
    %94 = tpu.matmul %91, %93, %cst_73 {dimension_numbers = #tpu.dot_dimension_numbers<[1], [0], [0], [1], [0, 0, 1, 1], [], []>} : vector<16x8xf32>, vector<8x64xf32>, vector<16x64xf32> -> vector<16x64xf32>
    %95 = arith.addf %90, %94 : vector<16x64xf32>
    %96 = vector.extract_strided_slice %62 {offsets = [32, 0], sizes = [16, 64], strides = [1, 1]} : vector<64x64xf32> to vector<16x64xf32>
    %c2_74 = arith.constant 2 : index
    %c0_75 = arith.constant 0 : index
    %c0_76 = arith.constant 0 : index
    %97 = vector.load %arg11[%c2_74, %c0_75, %c0_76] : memref<4x64x64xf32, #tpu.memory_space<vmem>>, vector<1x64x64xf32>
    %98 = vector.shape_cast %97 : vector<1x64x64xf32> to vector<64x64xf32>
    %cst_77 = arith.constant dense<0.000000e+00> : vector<16x64xf32>
    %99 = tpu.matmul %96, %98, %cst_77 {dimension_numbers = #tpu.dot_dimension_numbers<[1], [0], [0], [1], [0, 0, 1, 1], [], []>} : vector<16x64xf32>, vector<64x64xf32>, vector<16x64xf32> -> vector<16x64xf32>
    %100 = arith.addf %95, %99 : vector<16x64xf32>
    %101 = vector.extract_strided_slice %4 {offsets = [48, 0], sizes = [16, 8], strides = [1, 1]} : vector<64x8xf32> to vector<16x8xf32>
    %c3_78 = arith.constant 3 : index
    %c0_79 = arith.constant 0 : index
    %c0_80 = arith.constant 0 : index
    %102 = vector.load %arg10[%c3_78, %c0_79, %c0_80] : memref<4x8x64xf32, #tpu.memory_space<vmem>>, vector<1x8x64xf32>
    %103 = vector.shape_cast %102 : vector<1x8x64xf32> to vector<8x64xf32>
    %cst_81 = arith.constant dense<0.000000e+00> : vector<16x64xf32>
    %104 = tpu.matmul %101, %103, %cst_81 {dimension_numbers = #tpu.dot_dimension_numbers<[1], [0], [0], [1], [0, 0, 1, 1], [], []>} : vector<16x8xf32>, vector<8x64xf32>, vector<16x64xf32> -> vector<16x64xf32>
    %105 = arith.addf %100, %104 : vector<16x64xf32>
    %106 = vector.extract_strided_slice %62 {offsets = [48, 0], sizes = [16, 64], strides = [1, 1]} : vector<64x64xf32> to vector<16x64xf32>
    %c3_82 = arith.constant 3 : index
    %c0_83 = arith.constant 0 : index
    %c0_84 = arith.constant 0 : index
    %107 = vector.load %arg11[%c3_82, %c0_83, %c0_84] : memref<4x64x64xf32, #tpu.memory_space<vmem>>, vector<1x64x64xf32>
    %108 = vector.shape_cast %107 : vector<1x64x64xf32> to vector<64x64xf32>
    %cst_85 = arith.constant dense<0.000000e+00> : vector<16x64xf32>
    %109 = tpu.matmul %106, %108, %cst_85 {dimension_numbers = #tpu.dot_dimension_numbers<[1], [0], [0], [1], [0, 0, 1, 1], [], []>} : vector<16x64xf32>, vector<64x64xf32>, vector<16x64xf32> -> vector<16x64xf32>
    %110 = arith.addf %105, %109 : vector<16x64xf32>
    %111 = math.tanh %110 : vector<16x64xf32>
    %112 = arith.mulf %60, %3 : vector<16x64xf32>
    %cst_86 = arith.constant 1.000000e+00 : f32
    %113 = vector.broadcast %cst_86 : f32 to vector<16x64xf32>
    %114 = arith.subf %113, %60 : vector<16x64xf32>
    %115 = arith.mulf %114, %111 : vector<16x64xf32>
    %116 = arith.addf %112, %115 : vector<16x64xf32>
    %c1_87 = arith.constant 1 : index
    %c0_88 = arith.constant 0 : index
    %c0_89 = arith.constant 0 : index
    %117 = vector.load %arg1[%c1_87, %c0_88, %c0_89] : memref<2x16x64xf32, #tpu.memory_space<vmem>>, vector<1x16x64xf32>
    %118 = vector.shape_cast %117 : vector<1x16x64xf32> to vector<16x64xf32>
    %cst_90 = arith.constant dense<0.000000e+00> : vector<64x64xf32>
    %119 = tpu.matmul %0, %116, %cst_90 {dimension_numbers = #tpu.dot_dimension_numbers<[1], [0], [0], [1], [0, 0, 1, 1], [], []>} : vector<64x16xf32>, vector<16x64xf32>, vector<64x64xf32> -> vector<64x64xf32>
    %cst_91 = arith.constant dense<0.000000e+00> : vector<64x64xf32>
    %120 = tpu.matmul %0, %118, %cst_91 {dimension_numbers = #tpu.dot_dimension_numbers<[1], [0], [0], [1], [0, 0, 1, 1], [], []>} : vector<64x16xf32>, vector<16x64xf32>, vector<64x64xf32> -> vector<64x64xf32>
    %c0_92 = arith.constant 0 : index
    %c0_93 = arith.constant 0 : index
    %121 = vector.load %arg13[%c0_92, %c0_93] : memref<64x128xf32, #tpu.memory_space<vmem>>, vector<64x128xf32>
    %cst_94 = arith.constant dense<0.000000e+00> : vector<16x128xf32>
    %122 = tpu.matmul %116, %121, %cst_94 {dimension_numbers = #tpu.dot_dimension_numbers<[1], [0], [0], [1], [0, 0, 1, 1], [], []>} : vector<16x64xf32>, vector<64x128xf32>, vector<16x128xf32> -> vector<16x128xf32>
    %c0_95 = arith.constant 0 : index
    %c0_96 = arith.constant 0 : index
    %123 = vector.load %arg14[%c0_95, %c0_96] : memref<64x128xf32, #tpu.memory_space<vmem>>, vector<64x128xf32>
    %cst_97 = arith.constant dense<0.000000e+00> : vector<16x128xf32>
    %124 = tpu.matmul %118, %123, %cst_97 {dimension_numbers = #tpu.dot_dimension_numbers<[1], [0], [0], [1], [0, 0, 1, 1], [], []>} : vector<16x64xf32>, vector<64x128xf32>, vector<16x128xf32> -> vector<16x128xf32>
    %125 = arith.addf %122, %124 : vector<16x128xf32>
    %c0_98 = arith.constant 0 : index
    %c0_99 = arith.constant 0 : index
    %126 = vector.load %arg17[%c0_98, %c0_99] : memref<1x128xf32, #tpu.memory_space<vmem>>, vector<1x128xf32>
    %127 = vector.broadcast %126 : vector<1x128xf32> to vector<16x128xf32>
    %128 = arith.addf %125, %127 : vector<16x128xf32>
    %129 = vector.extract_strided_slice %119 {offsets = [0, 0], sizes = [16, 64], strides = [1, 1]} : vector<64x64xf32> to vector<16x64xf32>
    %c0_100 = arith.constant 0 : index
    %c0_101 = arith.constant 0 : index
    %c0_102 = arith.constant 0 : index
    %130 = vector.load %arg15[%c0_100, %c0_101, %c0_102] : memref<4x64x128xf32, #tpu.memory_space<vmem>>, vector<1x64x128xf32>
    %131 = vector.shape_cast %130 : vector<1x64x128xf32> to vector<64x128xf32>
    %cst_103 = arith.constant dense<0.000000e+00> : vector<16x128xf32>
    %132 = tpu.matmul %129, %131, %cst_103 {dimension_numbers = #tpu.dot_dimension_numbers<[1], [0], [0], [1], [0, 0, 1, 1], [], []>} : vector<16x64xf32>, vector<64x128xf32>, vector<16x128xf32> -> vector<16x128xf32>
    %133 = arith.addf %128, %132 : vector<16x128xf32>
    %134 = vector.extract_strided_slice %120 {offsets = [0, 0], sizes = [16, 64], strides = [1, 1]} : vector<64x64xf32> to vector<16x64xf32>
    %c0_104 = arith.constant 0 : index
    %c0_105 = arith.constant 0 : index
    %c0_106 = arith.constant 0 : index
    %135 = vector.load %arg16[%c0_104, %c0_105, %c0_106] : memref<4x64x128xf32, #tpu.memory_space<vmem>>, vector<1x64x128xf32>
    %136 = vector.shape_cast %135 : vector<1x64x128xf32> to vector<64x128xf32>
    %cst_107 = arith.constant dense<0.000000e+00> : vector<16x128xf32>
    %137 = tpu.matmul %134, %136, %cst_107 {dimension_numbers = #tpu.dot_dimension_numbers<[1], [0], [0], [1], [0, 0, 1, 1], [], []>} : vector<16x64xf32>, vector<64x128xf32>, vector<16x128xf32> -> vector<16x128xf32>
    %138 = arith.addf %133, %137 : vector<16x128xf32>
    %139 = vector.extract_strided_slice %119 {offsets = [16, 0], sizes = [16, 64], strides = [1, 1]} : vector<64x64xf32> to vector<16x64xf32>
    %c1_108 = arith.constant 1 : index
    %c0_109 = arith.constant 0 : index
    %c0_110 = arith.constant 0 : index
    %140 = vector.load %arg15[%c1_108, %c0_109, %c0_110] : memref<4x64x128xf32, #tpu.memory_space<vmem>>, vector<1x64x128xf32>
    %141 = vector.shape_cast %140 : vector<1x64x128xf32> to vector<64x128xf32>
    %cst_111 = arith.constant dense<0.000000e+00> : vector<16x128xf32>
    %142 = tpu.matmul %139, %141, %cst_111 {dimension_numbers = #tpu.dot_dimension_numbers<[1], [0], [0], [1], [0, 0, 1, 1], [], []>} : vector<16x64xf32>, vector<64x128xf32>, vector<16x128xf32> -> vector<16x128xf32>
    %143 = arith.addf %138, %142 : vector<16x128xf32>
    %144 = vector.extract_strided_slice %120 {offsets = [16, 0], sizes = [16, 64], strides = [1, 1]} : vector<64x64xf32> to vector<16x64xf32>
    %c1_112 = arith.constant 1 : index
    %c0_113 = arith.constant 0 : index
    %c0_114 = arith.constant 0 : index
    %145 = vector.load %arg16[%c1_112, %c0_113, %c0_114] : memref<4x64x128xf32, #tpu.memory_space<vmem>>, vector<1x64x128xf32>
    %146 = vector.shape_cast %145 : vector<1x64x128xf32> to vector<64x128xf32>
    %cst_115 = arith.constant dense<0.000000e+00> : vector<16x128xf32>
    %147 = tpu.matmul %144, %146, %cst_115 {dimension_numbers = #tpu.dot_dimension_numbers<[1], [0], [0], [1], [0, 0, 1, 1], [], []>} : vector<16x64xf32>, vector<64x128xf32>, vector<16x128xf32> -> vector<16x128xf32>
    %148 = arith.addf %143, %147 : vector<16x128xf32>
    %149 = vector.extract_strided_slice %119 {offsets = [32, 0], sizes = [16, 64], strides = [1, 1]} : vector<64x64xf32> to vector<16x64xf32>
    %c2_116 = arith.constant 2 : index
    %c0_117 = arith.constant 0 : index
    %c0_118 = arith.constant 0 : index
    %150 = vector.load %arg15[%c2_116, %c0_117, %c0_118] : memref<4x64x128xf32, #tpu.memory_space<vmem>>, vector<1x64x128xf32>
    %151 = vector.shape_cast %150 : vector<1x64x128xf32> to vector<64x128xf32>
    %cst_119 = arith.constant dense<0.000000e+00> : vector<16x128xf32>
    %152 = tpu.matmul %149, %151, %cst_119 {dimension_numbers = #tpu.dot_dimension_numbers<[1], [0], [0], [1], [0, 0, 1, 1], [], []>} : vector<16x64xf32>, vector<64x128xf32>, vector<16x128xf32> -> vector<16x128xf32>
    %153 = arith.addf %148, %152 : vector<16x128xf32>
    %154 = vector.extract_strided_slice %120 {offsets = [32, 0], sizes = [16, 64], strides = [1, 1]} : vector<64x64xf32> to vector<16x64xf32>
    %c2_120 = arith.constant 2 : index
    %c0_121 = arith.constant 0 : index
    %c0_122 = arith.constant 0 : index
    %155 = vector.load %arg16[%c2_120, %c0_121, %c0_122] : memref<4x64x128xf32, #tpu.memory_space<vmem>>, vector<1x64x128xf32>
    %156 = vector.shape_cast %155 : vector<1x64x128xf32> to vector<64x128xf32>
    %cst_123 = arith.constant dense<0.000000e+00> : vector<16x128xf32>
    %157 = tpu.matmul %154, %156, %cst_123 {dimension_numbers = #tpu.dot_dimension_numbers<[1], [0], [0], [1], [0, 0, 1, 1], [], []>} : vector<16x64xf32>, vector<64x128xf32>, vector<16x128xf32> -> vector<16x128xf32>
    %158 = arith.addf %153, %157 : vector<16x128xf32>
    %159 = vector.extract_strided_slice %119 {offsets = [48, 0], sizes = [16, 64], strides = [1, 1]} : vector<64x64xf32> to vector<16x64xf32>
    %c3_124 = arith.constant 3 : index
    %c0_125 = arith.constant 0 : index
    %c0_126 = arith.constant 0 : index
    %160 = vector.load %arg15[%c3_124, %c0_125, %c0_126] : memref<4x64x128xf32, #tpu.memory_space<vmem>>, vector<1x64x128xf32>
    %161 = vector.shape_cast %160 : vector<1x64x128xf32> to vector<64x128xf32>
    %cst_127 = arith.constant dense<0.000000e+00> : vector<16x128xf32>
    %162 = tpu.matmul %159, %161, %cst_127 {dimension_numbers = #tpu.dot_dimension_numbers<[1], [0], [0], [1], [0, 0, 1, 1], [], []>} : vector<16x64xf32>, vector<64x128xf32>, vector<16x128xf32> -> vector<16x128xf32>
    %163 = arith.addf %158, %162 : vector<16x128xf32>
    %164 = vector.extract_strided_slice %120 {offsets = [48, 0], sizes = [16, 64], strides = [1, 1]} : vector<64x64xf32> to vector<16x64xf32>
    %c3_128 = arith.constant 3 : index
    %c0_129 = arith.constant 0 : index
    %c0_130 = arith.constant 0 : index
    %165 = vector.load %arg16[%c3_128, %c0_129, %c0_130] : memref<4x64x128xf32, #tpu.memory_space<vmem>>, vector<1x64x128xf32>
    %166 = vector.shape_cast %165 : vector<1x64x128xf32> to vector<64x128xf32>
    %cst_131 = arith.constant dense<0.000000e+00> : vector<16x128xf32>
    %167 = tpu.matmul %164, %166, %cst_131 {dimension_numbers = #tpu.dot_dimension_numbers<[1], [0], [0], [1], [0, 0, 1, 1], [], []>} : vector<16x64xf32>, vector<64x128xf32>, vector<16x128xf32> -> vector<16x128xf32>
    %168 = arith.addf %163, %167 : vector<16x128xf32>
    %169 = arith.negf %168 : vector<16x128xf32>
    %170 = math.exp %169 : vector<16x128xf32>
    %cst_132 = arith.constant 1.000000e+00 : f32
    %171 = vector.broadcast %cst_132 : f32 to vector<16x128xf32>
    %172 = arith.addf %171, %170 : vector<16x128xf32>
    %173 = arith.divf %171, %172 : vector<16x128xf32>
    %174 = vector.extract_strided_slice %173 {offsets = [0, 0], sizes = [16, 64], strides = [1, 1]} : vector<16x128xf32> to vector<16x64xf32>
    %175 = vector.extract_strided_slice %173 {offsets = [0, 64], sizes = [16, 64], strides = [1, 1]} : vector<16x128xf32> to vector<16x64xf32>
    %176 = arith.mulf %174, %118 : vector<16x64xf32>
    %cst_133 = arith.constant dense<0.000000e+00> : vector<64x64xf32>
    %177 = tpu.matmul %0, %176, %cst_133 {dimension_numbers = #tpu.dot_dimension_numbers<[1], [0], [0], [1], [0, 0, 1, 1], [], []>} : vector<64x16xf32>, vector<16x64xf32>, vector<64x64xf32> -> vector<64x64xf32>
    %c0_134 = arith.constant 0 : index
    %c0_135 = arith.constant 0 : index
    %178 = vector.load %arg18[%c0_134, %c0_135] : memref<64x64xf32, #tpu.memory_space<vmem>>, vector<64x64xf32>
    %cst_136 = arith.constant dense<0.000000e+00> : vector<16x64xf32>
    %179 = tpu.matmul %116, %178, %cst_136 {dimension_numbers = #tpu.dot_dimension_numbers<[1], [0], [0], [1], [0, 0, 1, 1], [], []>} : vector<16x64xf32>, vector<64x64xf32>, vector<16x64xf32> -> vector<16x64xf32>
    %c0_137 = arith.constant 0 : index
    %c0_138 = arith.constant 0 : index
    %180 = vector.load %arg19[%c0_137, %c0_138] : memref<64x64xf32, #tpu.memory_space<vmem>>, vector<64x64xf32>
    %cst_139 = arith.constant dense<0.000000e+00> : vector<16x64xf32>
    %181 = tpu.matmul %176, %180, %cst_139 {dimension_numbers = #tpu.dot_dimension_numbers<[1], [0], [0], [1], [0, 0, 1, 1], [], []>} : vector<16x64xf32>, vector<64x64xf32>, vector<16x64xf32> -> vector<16x64xf32>
    %182 = arith.addf %179, %181 : vector<16x64xf32>
    %c0_140 = arith.constant 0 : index
    %c0_141 = arith.constant 0 : index
    %183 = vector.load %arg22[%c0_140, %c0_141] : memref<1x64xf32, #tpu.memory_space<vmem>>, vector<1x64xf32>
    %184 = vector.broadcast %183 : vector<1x64xf32> to vector<16x64xf32>
    %185 = arith.addf %182, %184 : vector<16x64xf32>
    %186 = vector.extract_strided_slice %119 {offsets = [0, 0], sizes = [16, 64], strides = [1, 1]} : vector<64x64xf32> to vector<16x64xf32>
    %c0_142 = arith.constant 0 : index
    %c0_143 = arith.constant 0 : index
    %c0_144 = arith.constant 0 : index
    %187 = vector.load %arg20[%c0_142, %c0_143, %c0_144] : memref<4x64x64xf32, #tpu.memory_space<vmem>>, vector<1x64x64xf32>
    %188 = vector.shape_cast %187 : vector<1x64x64xf32> to vector<64x64xf32>
    %cst_145 = arith.constant dense<0.000000e+00> : vector<16x64xf32>
    %189 = tpu.matmul %186, %188, %cst_145 {dimension_numbers = #tpu.dot_dimension_numbers<[1], [0], [0], [1], [0, 0, 1, 1], [], []>} : vector<16x64xf32>, vector<64x64xf32>, vector<16x64xf32> -> vector<16x64xf32>
    %190 = arith.addf %185, %189 : vector<16x64xf32>
    %191 = vector.extract_strided_slice %177 {offsets = [0, 0], sizes = [16, 64], strides = [1, 1]} : vector<64x64xf32> to vector<16x64xf32>
    %c0_146 = arith.constant 0 : index
    %c0_147 = arith.constant 0 : index
    %c0_148 = arith.constant 0 : index
    %192 = vector.load %arg21[%c0_146, %c0_147, %c0_148] : memref<4x64x64xf32, #tpu.memory_space<vmem>>, vector<1x64x64xf32>
    %193 = vector.shape_cast %192 : vector<1x64x64xf32> to vector<64x64xf32>
    %cst_149 = arith.constant dense<0.000000e+00> : vector<16x64xf32>
    %194 = tpu.matmul %191, %193, %cst_149 {dimension_numbers = #tpu.dot_dimension_numbers<[1], [0], [0], [1], [0, 0, 1, 1], [], []>} : vector<16x64xf32>, vector<64x64xf32>, vector<16x64xf32> -> vector<16x64xf32>
    %195 = arith.addf %190, %194 : vector<16x64xf32>
    %196 = vector.extract_strided_slice %119 {offsets = [16, 0], sizes = [16, 64], strides = [1, 1]} : vector<64x64xf32> to vector<16x64xf32>
    %c1_150 = arith.constant 1 : index
    %c0_151 = arith.constant 0 : index
    %c0_152 = arith.constant 0 : index
    %197 = vector.load %arg20[%c1_150, %c0_151, %c0_152] : memref<4x64x64xf32, #tpu.memory_space<vmem>>, vector<1x64x64xf32>
    %198 = vector.shape_cast %197 : vector<1x64x64xf32> to vector<64x64xf32>
    %cst_153 = arith.constant dense<0.000000e+00> : vector<16x64xf32>
    %199 = tpu.matmul %196, %198, %cst_153 {dimension_numbers = #tpu.dot_dimension_numbers<[1], [0], [0], [1], [0, 0, 1, 1], [], []>} : vector<16x64xf32>, vector<64x64xf32>, vector<16x64xf32> -> vector<16x64xf32>
    %200 = arith.addf %195, %199 : vector<16x64xf32>
    %201 = vector.extract_strided_slice %177 {offsets = [16, 0], sizes = [16, 64], strides = [1, 1]} : vector<64x64xf32> to vector<16x64xf32>
    %c1_154 = arith.constant 1 : index
    %c0_155 = arith.constant 0 : index
    %c0_156 = arith.constant 0 : index
    %202 = vector.load %arg21[%c1_154, %c0_155, %c0_156] : memref<4x64x64xf32, #tpu.memory_space<vmem>>, vector<1x64x64xf32>
    %203 = vector.shape_cast %202 : vector<1x64x64xf32> to vector<64x64xf32>
    %cst_157 = arith.constant dense<0.000000e+00> : vector<16x64xf32>
    %204 = tpu.matmul %201, %203, %cst_157 {dimension_numbers = #tpu.dot_dimension_numbers<[1], [0], [0], [1], [0, 0, 1, 1], [], []>} : vector<16x64xf32>, vector<64x64xf32>, vector<16x64xf32> -> vector<16x64xf32>
    %205 = arith.addf %200, %204 : vector<16x64xf32>
    %206 = vector.extract_strided_slice %119 {offsets = [32, 0], sizes = [16, 64], strides = [1, 1]} : vector<64x64xf32> to vector<16x64xf32>
    %c2_158 = arith.constant 2 : index
    %c0_159 = arith.constant 0 : index
    %c0_160 = arith.constant 0 : index
    %207 = vector.load %arg20[%c2_158, %c0_159, %c0_160] : memref<4x64x64xf32, #tpu.memory_space<vmem>>, vector<1x64x64xf32>
    %208 = vector.shape_cast %207 : vector<1x64x64xf32> to vector<64x64xf32>
    %cst_161 = arith.constant dense<0.000000e+00> : vector<16x64xf32>
    %209 = tpu.matmul %206, %208, %cst_161 {dimension_numbers = #tpu.dot_dimension_numbers<[1], [0], [0], [1], [0, 0, 1, 1], [], []>} : vector<16x64xf32>, vector<64x64xf32>, vector<16x64xf32> -> vector<16x64xf32>
    %210 = arith.addf %205, %209 : vector<16x64xf32>
    %211 = vector.extract_strided_slice %177 {offsets = [32, 0], sizes = [16, 64], strides = [1, 1]} : vector<64x64xf32> to vector<16x64xf32>
    %c2_162 = arith.constant 2 : index
    %c0_163 = arith.constant 0 : index
    %c0_164 = arith.constant 0 : index
    %212 = vector.load %arg21[%c2_162, %c0_163, %c0_164] : memref<4x64x64xf32, #tpu.memory_space<vmem>>, vector<1x64x64xf32>
    %213 = vector.shape_cast %212 : vector<1x64x64xf32> to vector<64x64xf32>
    %cst_165 = arith.constant dense<0.000000e+00> : vector<16x64xf32>
    %214 = tpu.matmul %211, %213, %cst_165 {dimension_numbers = #tpu.dot_dimension_numbers<[1], [0], [0], [1], [0, 0, 1, 1], [], []>} : vector<16x64xf32>, vector<64x64xf32>, vector<16x64xf32> -> vector<16x64xf32>
    %215 = arith.addf %210, %214 : vector<16x64xf32>
    %216 = vector.extract_strided_slice %119 {offsets = [48, 0], sizes = [16, 64], strides = [1, 1]} : vector<64x64xf32> to vector<16x64xf32>
    %c3_166 = arith.constant 3 : index
    %c0_167 = arith.constant 0 : index
    %c0_168 = arith.constant 0 : index
    %217 = vector.load %arg20[%c3_166, %c0_167, %c0_168] : memref<4x64x64xf32, #tpu.memory_space<vmem>>, vector<1x64x64xf32>
    %218 = vector.shape_cast %217 : vector<1x64x64xf32> to vector<64x64xf32>
    %cst_169 = arith.constant dense<0.000000e+00> : vector<16x64xf32>
    %219 = tpu.matmul %216, %218, %cst_169 {dimension_numbers = #tpu.dot_dimension_numbers<[1], [0], [0], [1], [0, 0, 1, 1], [], []>} : vector<16x64xf32>, vector<64x64xf32>, vector<16x64xf32> -> vector<16x64xf32>
    %220 = arith.addf %215, %219 : vector<16x64xf32>
    %221 = vector.extract_strided_slice %177 {offsets = [48, 0], sizes = [16, 64], strides = [1, 1]} : vector<64x64xf32> to vector<16x64xf32>
    %c3_170 = arith.constant 3 : index
    %c0_171 = arith.constant 0 : index
    %c0_172 = arith.constant 0 : index
    %222 = vector.load %arg21[%c3_170, %c0_171, %c0_172] : memref<4x64x64xf32, #tpu.memory_space<vmem>>, vector<1x64x64xf32>
    %223 = vector.shape_cast %222 : vector<1x64x64xf32> to vector<64x64xf32>
    %cst_173 = arith.constant dense<0.000000e+00> : vector<16x64xf32>
    %224 = tpu.matmul %221, %223, %cst_173 {dimension_numbers = #tpu.dot_dimension_numbers<[1], [0], [0], [1], [0, 0, 1, 1], [], []>} : vector<16x64xf32>, vector<64x64xf32>, vector<16x64xf32> -> vector<16x64xf32>
    %225 = arith.addf %220, %224 : vector<16x64xf32>
    %226 = math.tanh %225 : vector<16x64xf32>
    %227 = arith.mulf %175, %118 : vector<16x64xf32>
    %cst_174 = arith.constant 1.000000e+00 : f32
    %228 = vector.broadcast %cst_174 : f32 to vector<16x64xf32>
    %229 = arith.subf %228, %175 : vector<16x64xf32>
    %230 = arith.mulf %229, %226 : vector<16x64xf32>
    %231 = arith.addf %227, %230 : vector<16x64xf32>
    %232 = tpu.concatenate %116, %231 in 1 : vector<16x64xf32>, vector<16x64xf32> -> vector<16x128xf32>
    %c0_175 = arith.constant 0 : index
    %c0_176 = arith.constant 0 : index
    %233 = vector.load %arg23[%c0_175, %c0_176] : memref<16x128xf32, #tpu.memory_space<vmem>>, vector<16x128xf32>
    tpu.vector_store %arg23[%c0_175, %c0_176], %232 {strides = array<i32>} : memref<16x128xf32, #tpu.memory_space<vmem>>, vector<16x128xf32>,
    return
  }
}

</mosaic_0001>

<bundles_post_ra>
// kernel: tpu_custom_call.1
= control target key start
LH: loop header
LB: loop body
LE: loop exit
PB: predicated region body
PF: predicated region fallthrough
CT: control target
= control target key end

     0   :  { %s7688_s0 = inlined_call_operand.vmem [shape: f32[16,8], index: 0, kind: input, shape index: {}]   ;;  %s7689_s1 = inlined_call_operand.hbm [shape: f32[2,16,64], index: 1, kind: input, shape index: {}]   ;;  %s7690_s2 = inlined_call_operand.vmem [shape: f32[64,16], index: 2, kind: input, shape index: {}]   ;;  %s7691_s3 = inlined_call_operand.hbm [shape: f32[8,128], index: 3, kind: input, shape index: {}]   ;;  %s7692_s4 = inlined_call_operand.vmem [shape: f32[64,128], index: 4, kind: input, shape index: {}]   ;;  %s7693_s5 = inlined_call_operand.hbm [shape: f32[4,8,128], index: 5, kind: input, shape index: {}]   ;;  %s7694_s6 = inlined_call_operand.hbm [shape: f32[4,64,128], index: 6, kind: input, shape index: {}]   ;;  %s7695_s7 = inlined_call_operand.vmem [shape: f32[1,128], index: 7, kind: input, shape index: {}]   ;;  %s7696_s8 = inlined_call_operand.hbm [shape: f32[8,64], index: 8, kind: input, shape index: {}]   ;;  %s7697_s9 = inlined_call_operand.vmem [shape: f32[64,64], index: 9, kind: input, shape index: {}]   ;;  %s7698_s10 = inlined_call_operand.hbm [shape: f32[4,8,64], index: 10, kind: input, shape index: {}]   ;;  %s7699_s11 = inlined_call_operand.hbm [shape: f32[4,64,64], index: 11, kind: input, shape index: {}]   ;;  %s7700_s12 = inlined_call_operand.vmem [shape: f32[1,64], index: 12, kind: input, shape index: {}]   ;;  %s7701_s13 = inlined_call_operand.hbm [shape: f32[64,128], index: 13, kind: input, shape index: {}]   ;;  %s7702_s14 = inlined_call_operand.hbm [shape: f32[64,128], index: 14, kind: input, shape index: {}]   ;;  %s7703_s15 = inlined_call_operand.hbm [shape: f32[4,64,128], index: 15, kind: input, shape index: {}]   ;;  %s7704_s16 = inlined_call_operand.hbm [shape: f32[4,64,128], index: 16, kind: input, shape index: {}]   ;;  %s7705_s17 = inlined_call_operand.vmem [shape: f32[1,128], index: 17, kind: input, shape index: {}]   ;;  %s7706_s18 = inlined_call_operand.hbm [shape: f32[64,64], index: 18, kind: input, shape index: {}]   ;;  %s7707_s19 = inlined_call_operand.hbm [shape: f32[64,64], index: 19, kind: input, shape index: {}]   ;;  %s7708_s20 = inlined_call_operand.hbm [shape: f32[4,64,64], index: 20, kind: input, shape index: {}]   ;;  %s7709_s21 = inlined_call_operand.hbm [shape: f32[4,64,64], index: 21, kind: input, shape index: {}]   ;;  %s7710_s22 = inlined_call_operand.vmem [shape: f32[1,64], index: 22, kind: input, shape index: {}]   ;;  %s7711_s23 = inlined_call_operand.hbm [shape: f32[16,128], index: 23, kind: output, shape index: {}]  }
   0x1   :  { %7720 = sst [smem:[#allocation36_spill]] %s7688_s0 }
   0x2   :  { %7721 = sst [smem:[#allocation37_spill]] %s7689_s1 }
   0x3   :  { %7722 = sst [smem:[#allocation38_spill]] %s7690_s2 }
   0x4   :  { %7723 = sst [smem:[#allocation39_spill]] %s7691_s3 }
   0x5   :  { %7724 = sst [smem:[#allocation40_spill]] %s7692_s4 }
   0x6   :  { %7725 = sst [smem:[#allocation41_spill]] %s7693_s5 }
   0x7   :  { %7726 = sst [smem:[#allocation42_spill]] %s7694_s6 }
   0x8   :  { %7727 = sst [smem:[#allocation43_spill]] %s7695_s7 }
   0x9   :  { %7728 = sst [smem:[#allocation44_spill]] %s7711_s23 }
   0xa   :  { %28 = vsyncpa [#allocation3], 0 }
   0xb   :  { %29 = vsyncpa [#allocation6], 0 }
   0xc   :  { %30 = vsyncpa [#allocation9], 0 }
   0xd   :  { %31 = vsyncpa [#allocation12], 0 }
   0xe   :  { %32 = vsyncpa [#allocation15], 0 }
   0xf   :  { %33 = vsyncpa [#allocation18], 0 }
  0x10   :  { %34 = vsyncpa [#allocation21], 0 }
  0x11   :  { %35 = vsyncpa [#allocation24], 0 }
  0x12   :  { %36 = vsyncpa [#allocation4], 0  ;;  %s6856_s4 = smov [#allocation5]   ;;  %s7729_s5 = sld [smem:[#allocation39_spill]] }
  0x13   :  { %s59_s30 = sshll.u32 %s6856_s4, 4  ;;  %s60_s30 = int_to_ptr.vmem [resolvable:$true] %s59_s30 }
  0x18   :  { %s6486_s1 = scalar_lea.hbm %s7729_s5, 128 }
  0x19   :  { %p6487_p0 = scmp.ne.s32.totalorder %s7729_s5, %s6486_s1  ;;  %p6490_p1 = scmp.lt.u32.totalorder %s6486_s1, %s7729_s5 }
  0x1b   :  { %p6492_p2 = pnand %p6490_p1, %p6487_p0 }
  0x1d   :  { %6495 = shalt.err (!%p6492_p2)
}
  0x1e   :  { %s6496_s7 = scalar_lea.vmem %s60_s30, 128  ;;  %p6501_p4 = scmp.lt.s32.totalorder %s60_s30, %s60_s30 }
  0x1f   :  { %p6497_p3 = scmp.ne.s32.totalorder %s60_s30, %s6496_s7  ;;  %p6502_p5 = scmp.lt.s32.totalorder %s6496_s7, %s6496_s7 }
  0x21   :  { %p6503_p6 = por %p6502_p5, %p6501_p4 }
  0x23   :  { %p6504_p7 = pnand %p6503_p6, %p6497_p3 }
  0x25   :  { %6507 = shalt.err (!%p6504_p7)
}
  0x26   :  { %62 = dma.hbm_to_vmem [thread:$0]  %s7729_s5, 128, %s60_s30, [#allocation6]  }
  0x27   :  { %s6857_s3 = smov [#allocation8]   ;;  %s6858_s4 = smov [#allocation11]  }
  0x28   :  { %s82_s0 = sshll.u32 %s6857_s3, 4  ;;  %s108_s24 = sshll.u32 %s6858_s4, 4  ;;  %s83_s0 = int_to_ptr.vmem [resolvable:$true] %s82_s0  ;;  %s109_s24 = int_to_ptr.vmem [resolvable:$true] %s108_s24 }
  0x29   :  { %s7730_s26 = sld [smem:[#allocation42_spill]] }
  0x2f   :  { %s6508_s2 = scalar_lea.hbm %s7730_s26, 4096 }
  0x30   :  { %p6509_p8 = scmp.ne.s32.totalorder %s7730_s26, %s6508_s2  ;;  %p6512_p9 = scmp.lt.u32.totalorder %s6508_s2, %s7730_s26 }
  0x32   :  { %p6514_p10 = pnand %p6512_p9, %p6509_p8 }
  0x34   :  { %6517 = shalt.err (!%p6514_p10)
}
  0x35   :  { %s6518_s30 = scalar_lea.vmem %s83_s0, 4096  ;;  %p6523_p12 = scmp.lt.s32.totalorder %s83_s0, %s83_s0 }
  0x36   :  { %p6519_p11 = scmp.ne.s32.totalorder %s83_s0, %s6518_s30  ;;  %p6524_p13 = scmp.lt.s32.totalorder %s6518_s30, %s6518_s30 }
  0x38   :  { %p6525_p0 = por %p6524_p13, %p6523_p12 }
  0x3a   :  { %p6526_p1 = pnand %p6525_p0, %p6519_p11 }
  0x3c   :  { %6529 = shalt.err (!%p6526_p1)
}
  0x3d   :  { %s6859_s5 = smov 128   ;;  %s6860_s28 = smov 8  }
  0x3e   :  { %88 = dma.hbm_to_vmem [thread:$0]  %s7730_s26, 4096, %s83_s0, [#allocation9], %s6859_s5, %s6859_s5, %s6860_s28  }
  0x3f   :  { %s6530_s25 = scalar_lea.hbm %s7698_s10, 512 }
  0x40   :  { %p6531_p2 = scmp.ne.s32.totalorder %s7698_s10, %s6530_s25  ;;  %p6534_p3 = scmp.lt.u32.totalorder %s6530_s25, %s7698_s10 }
  0x42   :  { %p6536_p4 = pnand %p6534_p3, %p6531_p2 }
  0x44   :  { %6539 = shalt.err (!%p6536_p4)
}
  0x45   :  { %s6540_s7 = scalar_lea.vmem %s109_s24, 512  ;;  %p6545_p6 = scmp.lt.s32.totalorder %s109_s24, %s109_s24 }
  0x46   :  { %p6541_p5 = scmp.ne.s32.totalorder %s109_s24, %s6540_s7  ;;  %p6546_p7 = scmp.lt.s32.totalorder %s6540_s7, %s6540_s7 }
  0x48   :  { %p6547_p8 = por %p6546_p7, %p6545_p6 }
  0x4a   :  { %p6548_p9 = pnand %p6547_p8, %p6541_p5 }
  0x4c   :  { %6551 = shalt.err (!%p6548_p9)
}
  0x4d   :  { %114 = dma.hbm_to_vmem [thread:$0]  %s7698_s10, 512, %s109_s24, [#allocation12], %s6859_s5, %s6859_s5, %s6860_s28  }
  0x4e   :  { %s6861_s30 = smov [#allocation14]   ;;  %s6862_s3 = smov [#allocation17]  }
  0x4f   :  { %s134_s29 = sshll.u32 %s6861_s30, 4  ;;  %s158_s23 = sshll.u32 %s6862_s3, 4  ;;  %s135_s29 = int_to_ptr.vmem [resolvable:$true] %s134_s29  ;;  %s159_s23 = int_to_ptr.vmem [resolvable:$true] %s158_s23 }
  0x50   :  { %s6552_s1 = scalar_lea.hbm %s7701_s13, 1024 }
  0x51   :  { %p6553_p10 = scmp.ne.s32.totalorder %s7701_s13, %s6552_s1  ;;  %p6556_p11 = scmp.lt.u32.totalorder %s6552_s1, %s7701_s13 }
  0x53   :  { %p6558_p12 = pnand %p6556_p11, %p6553_p10 }
  0x55   :  { %6561 = shalt.err (!%p6558_p12)
}
  0x56   :  { %s6562_s10 = scalar_lea.vmem %s135_s29, 1024  ;;  %p6567_p0 = scmp.lt.s32.totalorder %s135_s29, %s135_s29 }
  0x57   :  { %p6563_p13 = scmp.ne.s32.totalorder %s135_s29, %s6562_s10  ;;  %p6568_p1 = scmp.lt.s32.totalorder %s6562_s10, %s6562_s10 }
  0x59   :  { %p6569_p2 = por %p6568_p1, %p6567_p0 }
  0x5b   :  { %p6570_p3 = pnand %p6569_p2, %p6563_p13 }
  0x5d   :  { %6573 = shalt.err (!%p6570_p3)
}
  0x5e   :  { %140 = dma.hbm_to_vmem [thread:$0]  %s7701_s13, 1024, %s135_s29, [#allocation15], %s6859_s5, %s6859_s5, %s6860_s28  }
  0x5f   :  { %s6574_s3 = scalar_lea.hbm %s7703_s15, 4096 }
  0x60   :  { %p6575_p4 = scmp.ne.s32.totalorder %s7703_s15, %s6574_s3  ;;  %p6578_p5 = scmp.lt.u32.totalorder %s6574_s3, %s7703_s15 }
  0x62   :  { %p6580_p6 = pnand %p6578_p5, %p6575_p4 }
  0x64   :  { %6583 = shalt.err (!%p6580_p6)
}
  0x65   :  { %s6584_s6 = scalar_lea.vmem %s159_s23, 4096  ;;  %p6589_p8 = scmp.lt.s32.totalorder %s159_s23, %s159_s23 }
  0x66   :  { %p6585_p7 = scmp.ne.s32.totalorder %s159_s23, %s6584_s6  ;;  %p6590_p9 = scmp.lt.s32.totalorder %s6584_s6, %s6584_s6 }
  0x68   :  { %p6591_p10 = por %p6590_p9, %p6589_p8 }
  0x6a   :  { %p6592_p11 = pnand %p6591_p10, %p6585_p7 }
  0x6c   :  { %6595 = shalt.err (!%p6592_p11)
}
  0x6d   :  { %164 = dma.hbm_to_vmem [thread:$0]  %s7703_s15, 4096, %s159_s23, [#allocation18], %s6859_s5, %s6859_s5, %s6860_s28  }
  0x6e   :  { %s6863_s27 = smov [#allocation20]   ;;  %s6864_s10 = smov [#allocation23]  }
  0x6f   :  { %s184_s7 = sshll.u32 %s6863_s27, 4  ;;  %s208_s24 = sshll.u32 %s6864_s10, 4  ;;  %s185_s7 = int_to_ptr.vmem [resolvable:$true] %s184_s7  ;;  %s209_s24 = int_to_ptr.vmem [resolvable:$true] %s208_s24 }
  0x70   :  { %s6596_s30 = scalar_lea.hbm %s7706_s18, 1024 }
  0x71   :  { %p6597_p12 = scmp.ne.s32.totalorder %s7706_s18, %s6596_s30  ;;  %p6600_p13 = scmp.lt.u32.totalorder %s6596_s30, %s7706_s18 }
  0x73   :  { %p6602_p0 = pnand %p6600_p13, %p6597_p12 }
  0x75   :  { %6605 = shalt.err (!%p6602_p0)
}
  0x76   :  { %s6606_s15 = scalar_lea.vmem %s185_s7, 1024  ;;  %p6611_p2 = scmp.lt.s32.totalorder %s185_s7, %s185_s7 }
  0x77   :  { %p6607_p1 = scmp.ne.s32.totalorder %s185_s7, %s6606_s15  ;;  %p6612_p3 = scmp.lt.s32.totalorder %s6606_s15, %s6606_s15 }
  0x79   :  { %p6613_p4 = por %p6612_p3, %p6611_p2 }
  0x7b   :  { %p6614_p5 = pnand %p6613_p4, %p6607_p1 }
  0x7d   :  { %6617 = shalt.err (!%p6614_p5)
}
  0x7e   :  { %190 = dma.hbm_to_vmem [thread:$0]  %s7706_s18, 1024, %s185_s7, [#allocation21], %s6859_s5, %s6859_s5, %s6860_s28  }
  0x7f   :  { %s6618_s29 = scalar_lea.hbm %s7708_s20, 4096 }
  0x80   :  { %p6619_p6 = scmp.ne.s32.totalorder %s7708_s20, %s6618_s29  ;;  %p6622_p7 = scmp.lt.u32.totalorder %s6618_s29, %s7708_s20 }
  0x82   :  { %p6624_p8 = pnand %p6622_p7, %p6619_p6 }
  0x84   :  { %6627 = shalt.err (!%p6624_p8)
}
  0x85   :  { %s6628_s30 = scalar_lea.vmem %s209_s24, 4096  ;;  %p6633_p10 = scmp.lt.s32.totalorder %s209_s24, %s209_s24 }
  0x86   :  { %p6629_p9 = scmp.ne.s32.totalorder %s209_s24, %s6628_s30  ;;  %p6634_p11 = scmp.lt.s32.totalorder %s6628_s30, %s6628_s30 }
  0x88   :  { %p6635_p12 = por %p6634_p11, %p6633_p10 }
  0x8a   :  { %p6636_p13 = pnand %p6635_p12, %p6629_p9 }
  0x8c   :  { %6639 = shalt.err (!%p6636_p13)
}
  0x8d   :  { %214 = dma.hbm_to_vmem [thread:$0]  %s7708_s20, 4096, %s209_s24, [#allocation24], %s6859_s5, %s6859_s5, %s6860_s28  }
  0x8e   :  { %s6865_s3 = smov [#allocation2]   ;;  %s6866_s25 = smov [#allocation7]  }
  0x8f   :  { %s44_s4 = sshll.u32 %s6865_s3, 4  ;;  %s70_s1 = sshll.u32 %s6866_s25, 4  ;;  %s45_s4 = int_to_ptr.vmem [resolvable:$true] %s44_s4  ;;  %s71_s1 = int_to_ptr.vmem [resolvable:$true] %s70_s1 }
  0x90   :  { %s7731_s2 = sld [smem:[#allocation37_spill]] }
  0x96   :  { %s6640_s6 = scalar_lea.hbm %s7731_s2, 512 }
  0x97   :  { %p6641_p0 = scmp.ne.s32.totalorder %s7731_s2, %s6640_s6  ;;  %p6644_p1 = scmp.lt.u32.totalorder %s6640_s6, %s7731_s2 }
  0x99   :  { %p6646_p2 = pnand %p6644_p1, %p6641_p0 }
  0x9b   :  { %6649 = shalt.err (!%p6646_p2)
}
  0x9c   :  { %s6650_s20 = scalar_lea.vmem %s45_s4, 512  ;;  %p6655_p4 = scmp.lt.s32.totalorder %s45_s4, %s45_s4 }
  0x9d   :  { %p6651_p3 = scmp.ne.s32.totalorder %s45_s4, %s6650_s20  ;;  %p6656_p5 = scmp.lt.s32.totalorder %s6650_s20, %s6650_s20 }
  0x9f   :  { %p6657_p6 = por %p6656_p5, %p6655_p4 }
  0xa1   :  { %p6658_p7 = pnand %p6657_p6, %p6651_p3 }
  0xa3   :  { %6661 = shalt.err (!%p6658_p7)
}
  0xa4   :  { %50 = dma.hbm_to_vmem [thread:$0]  %s7731_s2, 512, %s45_s4, [#allocation3], %s6859_s5, %s6859_s5, %s6860_s28  }
  0xa5   :  { %s7732_s18 = sld [smem:[#allocation41_spill]] }
  0xab   :  { %s6662_s7 = scalar_lea.hbm %s7732_s18, 512 }
  0xac   :  { %p6663_p8 = scmp.ne.s32.totalorder %s7732_s18, %s6662_s7  ;;  %p6666_p9 = scmp.lt.u32.totalorder %s6662_s7, %s7732_s18 }
  0xae   :  { %p6668_p10 = pnand %p6666_p9, %p6663_p8 }
  0xb0   :  { %6671 = shalt.err (!%p6668_p10)
}
  0xb1   :  { %s6672_s6 = scalar_lea.vmem %s71_s1, 512  ;;  %p6677_p12 = scmp.lt.s32.totalorder %s71_s1, %s71_s1 }
  0xb2   :  { %p6673_p11 = scmp.ne.s32.totalorder %s71_s1, %s6672_s6  ;;  %p6678_p13 = scmp.lt.s32.totalorder %s6672_s6, %s6672_s6 }
  0xb4   :  { %p6679_p0 = por %p6678_p13, %p6677_p12 }
  0xb6   :  { %p6680_p1 = pnand %p6679_p0, %p6673_p11 }
  0xb8   :  { %6683 = shalt.err (!%p6680_p1)
}
  0xb9   :  { %76 = dma.hbm_to_vmem [thread:$0]  %s7732_s18, 512, %s71_s1, [#allocation6], %s6859_s5, %s6859_s5, %s6860_s28  }
  0xba   :  { %s6867_s13 = smov [#allocation10]   ;;  %s6868_s27 = smov [#allocation13]  }
  0xbb   :  { %s97_s29 = sshll.u32 %s6867_s13, 4  ;;  %s120_s10 = sshll.u32 %s6868_s27, 4  ;;  %s98_s29 = int_to_ptr.vmem [resolvable:$true] %s97_s29  ;;  %s121_s10 = int_to_ptr.vmem [resolvable:$true] %s120_s10 }
  0xbc   :  { %s6684_s0 = scalar_lea.hbm %s7696_s8, 128 }
  0xbd   :  { %p6685_p2 = scmp.ne.s32.totalorder %s7696_s8, %s6684_s0  ;;  %p6688_p3 = scmp.lt.u32.totalorder %s6684_s0, %s7696_s8 }
  0xbf   :  { %p6690_p4 = pnand %p6688_p3, %p6685_p2 }
  0xc1   :  { %6693 = shalt.err (!%p6690_p4)
}
  0xc2   :  { %s6694_s1 = scalar_lea.vmem %s98_s29, 128  ;;  %p6699_p6 = scmp.lt.s32.totalorder %s98_s29, %s98_s29 }
  0xc3   :  { %p6695_p5 = scmp.ne.s32.totalorder %s98_s29, %s6694_s1  ;;  %p6700_p7 = scmp.lt.s32.totalorder %s6694_s1, %s6694_s1 }
  0xc5   :  { %p6701_p8 = por %p6700_p7, %p6699_p6 }
  0xc7   :  { %p6702_p9 = pnand %p6701_p8, %p6695_p5 }
  0xc9   :  { %6705 = shalt.err (!%p6702_p9)
}
  0xca   :  { %100 = dma.hbm_to_vmem [thread:$0]  %s7696_s8, 128, %s98_s29, [#allocation9]  }
  0xcb   :  { %s6706_s6 = scalar_lea.hbm %s7699_s11, 4096 }
  0xcc   :  { %p6707_p10 = scmp.ne.s32.totalorder %s7699_s11, %s6706_s6  ;;  %p6710_p11 = scmp.lt.u32.totalorder %s6706_s6, %s7699_s11 }
  0xce   :  { %p6712_p12 = pnand %p6710_p11, %p6707_p10 }
  0xd0   :  { %6715 = shalt.err (!%p6712_p12)
}
  0xd1   :  { %s6716_s20 = scalar_lea.vmem %s121_s10, 4096  ;;  %p6721_p0 = scmp.lt.s32.totalorder %s121_s10, %s121_s10 }
  0xd2   :  { %p6717_p13 = scmp.ne.s32.totalorder %s121_s10, %s6716_s20  ;;  %p6722_p1 = scmp.lt.s32.totalorder %s6716_s20, %s6716_s20 }
  0xd4   :  { %p6723_p2 = por %p6722_p1, %p6721_p0 }
  0xd6   :  { %p6724_p3 = pnand %p6723_p2, %p6717_p13 }
  0xd8   :  { %6727 = shalt.err (!%p6724_p3)
}
  0xd9   :  { %126 = dma.hbm_to_vmem [thread:$0]  %s7699_s11, 4096, %s121_s10, [#allocation12], %s6859_s5, %s6859_s5, %s6860_s28  }
  0xda   :  { %s6869_s24 = smov [#allocation16]   ;;  %s6870_s26 = smov [#allocation19]  }
  0xdb   :  { %s146_s0 = sshll.u32 %s6869_s24, 4  ;;  %s170_s30 = sshll.u32 %s6870_s26, 4  ;;  %s147_s0 = int_to_ptr.vmem [resolvable:$true] %s146_s0  ;;  %s171_s30 = int_to_ptr.vmem [resolvable:$true] %s170_s30 }
  0xdc   :  { %s6728_s1 = scalar_lea.hbm %s7702_s14, 1024 }
  0xdd   :  { %p6729_p4 = scmp.ne.s32.totalorder %s7702_s14, %s6728_s1  ;;  %p6732_p5 = scmp.lt.u32.totalorder %s6728_s1, %s7702_s14 }
  0xdf   :  { %p6734_p6 = pnand %p6732_p5, %p6729_p4 }
  0xe1   :  { %6737 = shalt.err (!%p6734_p6)
}
  0xe2   :  { %s6738_s11 = scalar_lea.vmem %s147_s0, 1024  ;;  %p6743_p8 = scmp.lt.s32.totalorder %s147_s0, %s147_s0 }
  0xe3   :  { %p6739_p7 = scmp.ne.s32.totalorder %s147_s0, %s6738_s11  ;;  %p6744_p9 = scmp.lt.s32.totalorder %s6738_s11, %s6738_s11 }
  0xe5   :  { %p6745_p10 = por %p6744_p9, %p6743_p8 }
  0xe7   :  { %p6746_p11 = pnand %p6745_p10, %p6739_p7 }
  0xe9   :  { %6749 = shalt.err (!%p6746_p11)
}
  0xea   :  { %152 = dma.hbm_to_vmem [thread:$0]  %s7702_s14, 1024, %s147_s0, [#allocation15], %s6859_s5, %s6859_s5, %s6860_s28  }
  0xeb   :  { %s6750_s13 = scalar_lea.hbm %s7704_s16, 4096 }
  0xec   :  { %p6751_p12 = scmp.ne.s32.totalorder %s7704_s16, %s6750_s13  ;;  %p6754_p13 = scmp.lt.u32.totalorder %s6750_s13, %s7704_s16 }
  0xee   :  { %p6756_p0 = pnand %p6754_p13, %p6751_p12 }
  0xf0   :  { %6759 = shalt.err (!%p6756_p0)
}
  0xf1   :  { %s6760_s24 = scalar_lea.vmem %s171_s30, 4096  ;;  %p6765_p2 = scmp.lt.s32.totalorder %s171_s30, %s171_s30 }
  0xf2   :  { %p6761_p1 = scmp.ne.s32.totalorder %s171_s30, %s6760_s24  ;;  %p6766_p3 = scmp.lt.s32.totalorder %s6760_s24, %s6760_s24 }
  0xf4   :  { %p6767_p4 = por %p6766_p3, %p6765_p2 }
  0xf6   :  { %p6768_p5 = pnand %p6767_p4, %p6761_p1 }
  0xf8   :  { %6771 = shalt.err (!%p6768_p5)
}
  0xf9   :  { %176 = dma.hbm_to_vmem [thread:$0]  %s7704_s16, 4096, %s171_s30, [#allocation18], %s6859_s5, %s6859_s5, %s6860_s28  }
  0xfa   :  { %s6871_s26 = smov [#allocation22]   ;;  %s6872_s3 = smov [#allocation25]  }
  0xfb   :  { %s196_s7 = sshll.u32 %s6871_s26, 4  ;;  %s220_s1 = sshll.u32 %s6872_s3, 4  ;;  %s197_s7 = int_to_ptr.vmem [resolvable:$true] %s196_s7  ;;  %s221_s1 = int_to_ptr.vmem [resolvable:$true] %s220_s1 }
  0xfc   :  { %s6772_s15 = scalar_lea.hbm %s7707_s19, 1024 }
  0xfd   :  { %p6773_p6 = scmp.ne.s32.totalorder %s7707_s19, %s6772_s15  ;;  %p6776_p7 = scmp.lt.u32.totalorder %s6772_s15, %s7707_s19 }
  0xff   :  { %p6778_p8 = pnand %p6776_p7, %p6773_p6 }
 0x101   :  { %6781 = shalt.err (!%p6778_p8)
}
 0x102   :  { %s6782_s16 = scalar_lea.vmem %s197_s7, 1024  ;;  %p6787_p10 = scmp.lt.s32.totalorder %s197_s7, %s197_s7 }
 0x103   :  { %p6783_p9 = scmp.ne.s32.totalorder %s197_s7, %s6782_s16  ;;  %p6788_p11 = scmp.lt.s32.totalorder %s6782_s16, %s6782_s16 }
 0x105   :  { %p6789_p12 = por %p6788_p11, %p6787_p10 }
 0x107   :  { %p6790_p13 = pnand %p6789_p12, %p6783_p9 }
 0x109   :  { %6793 = shalt.err (!%p6790_p13)
}
 0x10a   :  { %202 = dma.hbm_to_vmem [thread:$0]  %s7707_s19, 1024, %s197_s7, [#allocation21], %s6859_s5, %s6859_s5, %s6860_s28  }
 0x10b   :  { %s6794_s27 = scalar_lea.hbm %s7709_s21, 4096 }
 0x10c   :  { %p6795_p0 = scmp.ne.s32.totalorder %s7709_s21, %s6794_s27  ;;  %p6798_p1 = scmp.lt.u32.totalorder %s6794_s27, %s7709_s21 }
 0x10e   :  { %p6800_p2 = pnand %p6798_p1, %p6795_p0 }
 0x110   :  { %6803 = shalt.err (!%p6800_p2)
}
 0x111   :  { %s6804_s14 = scalar_lea.vmem %s221_s1, 4096  ;;  %p6809_p4 = scmp.lt.s32.totalorder %s221_s1, %s221_s1 }
 0x112   :  { %p6805_p3 = scmp.ne.s32.totalorder %s221_s1, %s6804_s14  ;;  %p6810_p5 = scmp.lt.s32.totalorder %s6804_s14, %s6804_s14 }
 0x114   :  { %p6811_p6 = por %p6810_p5, %p6809_p4 }
 0x116   :  { %p6812_p7 = pnand %p6811_p6, %p6805_p3 }
 0x118   :  { %6815 = shalt.err (!%p6812_p7)
}
 0x119   :  { %226 = dma.hbm_to_vmem [thread:$0]  %s7709_s21, 4096, %s221_s1, [#allocation24], %s6859_s5, %s6859_s5, %s6860_s28  }
 0x11a   :  { %6838 = dma.done.wait [#allocation3], 512  }
 0x11b   :  { %6839 = vsyncadd [#allocation3], 4294966784 }
 0x11c   :  { %6840 = dma.done.wait [#allocation6], 640  }
 0x11d   :  { %6841 = vsyncadd [#allocation6], 4294966656 }
 0x11e   :  { %6842 = dma.done.wait [#allocation9], 4224  }
 0x11f   :  { %6843 = vsyncadd [#allocation9], 4294963072 }
 0x120   :  { %6844 = dma.done.wait [#allocation12], 4608  }
 0x121   :  { %6845 = vsyncadd [#allocation12], 4294962688 }
 0x122   :  { %6846 = dma.done.wait [#allocation15], 2048  }
 0x123   :  { %6847 = vsyncadd [#allocation15], 4294965248 }
 0x124   :  { %6848 = dma.done.wait [#allocation18], 8192  }
 0x125   :  { %6849 = vsyncadd [#allocation18], 4294959104 }
 0x126   :  { %6850 = dma.done.wait [#allocation21], 2048  }
 0x127   :  { %6851 = vsyncadd [#allocation21], 4294965248 }
 0x128   :  { %6852 = dma.done.wait [#allocation24], 8192  }
 0x129   :  { %6853 = vsyncadd [#allocation24], 4294959104  ;;  %vm286_vm0 = vcmask 130048   ;;  %s7733_s21 = sld [smem:[#allocation36_spill]]  ;;  %v7224_v2 = vld [vmem:[#allocation2] sm:$0xff]  ;;  %v7228_v4 = vld [vmem:[#allocation2 + $0x8] sm:$0xff] }
 0x12a   :  { %s7734_s15 = sld [smem:[#allocation38_spill]]  ;;  %v5856_v6 = vpack.c.bf16 %v7228_v4, %v7224_v2  ;;  %s7735_s16 = sld [smem:[#allocation40_spill]]  ;;  %v787_v16 = vld [vmem:[#allocation8] sm:$0xff]  ;;  %v788_v18 = vld [vmem:[#allocation8 + $0x8] sm:$0xff]  ;;  %v789_v19 = vld [vmem:[#allocation8 + $0x10] sm:$0xff]  ;;  %vm530_vm1 = vcmask 523264  }
 0x12b   :  { %v5876_v21 = vpack.c.bf16 %v788_v18, %v787_v16  ;;  %v790_v22 = vld [vmem:[#allocation8 + $0x18] sm:$0xff]  ;;  %v791_v28 = vld [vmem:[#allocation8 + $0x20] sm:$0xff]  ;;  %v792_v29 = vld [vmem:[#allocation8 + $0x28] sm:$0xff]  ;;  %vm612_vm2 = vcmask 64512   ;;  %s6873_s2 = smov 64   ;;  %s7736_s20 = sld [smem:[#allocation43_spill]] }
 0x12c   :  { %5857 = vmatprep.subr.bf16.mxu1 %v5856_v6  ;;  %v5880_v26 = vpack.c.bf16 %v790_v22, %v789_v19  ;;  %v5884_v33 = vpack.c.bf16 %v792_v29, %v791_v28  ;;  %v521_v35 = vld [vmem:[#allocation5] sm:$0xff]  ;;  %v793_v36 = vld [vmem:[#allocation8 + $0x30] sm:$0xff]  ;;  %v703_v39 = vld [vmem:[#allocation7] sm:$0xff]  ;;  %2386 = vrot.lane.b32.xlu0 %v7224_v2, %s6873_s2 }
 0x12d   :  { %5859 = vmatpush3.bf16.msra.mxu1 %v5856_v6  ;;  %v794_v37 = vld [vmem:[#allocation8 + $0x38] sm:$0xff]  ;;  %v879_v40 = vld [vmem:[#allocation7 + $0x8] sm:$0xff]  ;;  %v964_v41 = vld [vmem:[#allocation8 + $0x40] sm:$0xff] }
 0x12e   :  { %5877 = vmatprep.subr.bf16.mxu1 %v5876_v21  ;;  %v5888_v38 = vpack.c.bf16 %v794_v37, %v793_v36  ;;  %v965_v42 = vld [vmem:[#allocation8 + $0x48] sm:$0xff]  ;;  %v966_v48 = vld [vmem:[#allocation8 + $0x50] sm:$0xff]  ;;  %v967_v49 = vld [vmem:[#allocation8 + $0x58] sm:$0xff] }
 0x12f   :  { %v7217_v0 = vld [vmem:[%s7733_s21] sm:$0xff]  ;;  %v7222_v1 = vld [vmem:[%s7733_s21 + $0x8] sm:$0xff]  ;;  %v5892_v46 = vpack.c.bf16 %v965_v42, %v964_v41  ;;  %v5896_v52 = vpack.c.bf16 %v967_v49, %v966_v48  ;;  %v969_v55 = vld [vmem:[#allocation8 + $0x68] sm:$0xff] }
 0x130   :  { %v5852_v3 = vpack.c.bf16 %v7222_v1, %v7217_v0  ;;  %v7233_v5 = vld [vmem:[%s7734_s15] sm:$0xff]  ;;  %v7244_v7 = vld [vmem:[%s7734_s15 + $0x8] sm:$0xff]  ;;  %v524_v10 = vld [vmem:[%s7735_s16 + $0x10] sm:$0xff]  ;;  %2388 = vrot.lane.b32.xlu0 %v7228_v4, %s6873_s2 }
 0x131   :  { %5140 = vmatprep.mubr.msk.f32.mxu0 %vm286_vm0, %v7233_v5  ;;  %5156 = vmatprep.mubr.msk.f32.mxu1 %vm286_vm0, %v7233_v5  ;;  %v522_v8 = vld [vmem:[%s7735_s16] sm:$0xff]  ;;  %v523_v9 = vld [vmem:[%s7735_s16 + $0x8] sm:$0xff]  ;;  %v7258_v11 = vld [vmem:[%s7734_s15 + $0x10] sm:$0xff] }
 0x132   :  { %5853 = vmatprep.subr.bf16.mxu0 %v5852_v3  ;;  %v5860_v12 = vpack.c.bf16 %v523_v9, %v522_v8  ;;  %v525_v13 = vld [vmem:[%s7735_s16 + $0x18] sm:$0xff]  ;;  %v526_v15 = vld [vmem:[%s7735_s16 + $0x20] sm:$0xff]  ;;  %v527_v17 = vld [vmem:[%s7735_s16 + $0x28] sm:$0xff]  ;;  %5157 = vmatmul.mubr.msk.f32.vlgmr.msra.gmra.mrb[0].mxu1 %vm286_vm0, %v7244_v7 }
 0x133   :  { %5855 = vmatpush3.bf16.msra.mxu0 %v5852_v3  ;;  %v5864_v14 = vpack.c.bf16 %v525_v13, %v524_v10  ;;  %v7278_v20 = vld [vmem:[%s7734_s15 + $0x18] sm:$0xff]  ;;  %5159 = vmatprep.mubr.msk.f32.mxu1 %vm286_vm0, %v7258_v11  ;;  %v7285_v23 = vld [vmem:[%s7734_s15 + $0x20] sm:$0xff]  ;;  %v5868_v24 = vpack.c.bf16 %v527_v17, %v526_v15  ;;  %v528_v25 = vld [vmem:[%s7735_s16 + $0x30] sm:$0xff] }
 0x134   :  { %5861 = vmatprep.subr.bf16.mxu0 %v5860_v12  ;;  %v529_v27 = vld [vmem:[%s7735_s16 + $0x38] sm:$0xff]  ;;  %5879 = vmatpush3.bf16.msra.mxu1 %v5876_v21  ;;  %v7302_v30 = vld [vmem:[%s7734_s15 + $0x28] sm:$0xff]  ;;  %v7309_v31 = vld [vmem:[%s7734_s15 + $0x30] sm:$0xff] }
 0x135   :  { %v5872_v32 = vpack.c.bf16 %v529_v27, %v528_v25  ;;  %5881 = vmatprep.subr.bf16.mxu1 %v5880_v26  ;;  %v7320_v34 = vld [vmem:[%s7734_s15 + $0x38] sm:$0xff]  ;;  %v968_v54 = vld [vmem:[#allocation8 + $0x60] sm:$0xff]  ;;  %v971_v62 = vld [vmem:[#allocation8 + $0x78] sm:$0xff] }
 0x136   :  { %5141 = vmatmul.mubr.msk.f32.vlgmr.msra.gmra.mrb[0].mxu0 %vm286_vm0, %v7244_v7  ;;  %5160 = vmatmul.mubr.msk.f32.gmra.mrb[2].mxu1 %vm286_vm0, %v7278_v20  ;;  %v5900_v58 = vpack.c.bf16 %v969_v55, %v968_v54  ;;  %v970_v61 = vld [vmem:[#allocation8 + $0x70] sm:$0xff]  ;;  %v1141_v13 = vld [vmem:[#allocation8 + $0x80] sm:$0xff]  ;;  %v1144_v17 = vld [vmem:[#allocation8 + $0x98] sm:$0xff] }
 0x137   :  { %5143 = vmatprep.mubr.msk.f32.mxu0 %vm286_vm0, %v7258_v11  ;;  %5863 = vmatpush3.bf16.msra.mxu0 %v5860_v12  ;;  %v5904_v6 = vpack.c.bf16 %v971_v62, %v970_v61  ;;  %v1056_v12 = vld [vmem:[#allocation7 + $0x10] sm:$0xff]  ;;  %v1145_v19 = vld [vmem:[#allocation8 + $0xa0] sm:$0xff]  ;;  %v1146_v21 = vld [vmem:[#allocation8 + $0xa8] sm:$0xff] }
 0x138   :  { %5865 = vmatprep.subr.bf16.mxu0 %v5864_v14  ;;  %5162 = vmatprep.mubr.msk.f32.mxu1 %vm286_vm0, %v7285_v23  ;;  %v1143_v16 = vld [vmem:[#allocation8 + $0x90] sm:$0xff]  ;;  %v5916_v22 = vpack.c.bf16 %v1146_v21, %v1145_v19  ;;  %v1148_v25 = vld [vmem:[#allocation8 + $0xb8] sm:$0xff]  ;;  %v1318_v28 = vld [vmem:[#allocation8 + $0xc0] sm:$0xff] }
 0x139   :  { %5883 = vmatpush3.bf16.msra.mxu1 %v5880_v26  ;;  %v5912_v18 = vpack.c.bf16 %v1144_v17, %v1143_v16  ;;  %v1233_v27 = vld [vmem:[#allocation7 + $0x18] sm:$0xff]  ;;  %v1319_v29 = vld [vmem:[#allocation8 + $0xc8] sm:$0xff]  ;;  %v1322_v37 = vld [vmem:[#allocation8 + $0xe0] sm:$0xff] }
 0x13a   :  { %5144 = vmatmul.mubr.msk.f32.gmra.mrb[2].mxu0 %vm286_vm0, %v7278_v20  ;;  %5163 = vmatmul.mubr.msk.f32.gmra.mrb[4].mxu1 %vm286_vm0, %v7302_v30  ;;  %v1325_v41 = vld [vmem:[#allocation8 + $0xf8] sm:$0xff]  ;;  %v1530_v17 = vld [vmem:[%s7697_s9 + $0x8] sm:$0xff] }
 0x13b   :  { %5146 = vmatprep.mubr.msk.f32.mxu0 %vm286_vm0, %v7285_v23  ;;  %5867 = vmatpush3.bf16.msra.mxu0 %v5864_v14  ;;  %v1142_v14 = vld [vmem:[#allocation8 + $0x88] sm:$0xff]  ;;  %v1529_v16 = vld [vmem:[%s7697_s9] sm:$0xff] }
 0x13c   :  { %5869 = vmatprep.subr.bf16.mxu0 %v5868_v24  ;;  %5165 = vmatprep.mubr.msk.f32.mxu1 %vm286_vm0, %v7309_v31  ;;  %v5908_v15 = vpack.c.bf16 %v1142_v14, %v1141_v13  ;;  %v5944_v21 = vpack.c.bf16 %v1530_v17, %v1529_v16  ;;  %v2043_v16 = vld [vmem:[#allocation11 + $0x10] sm:$0xff]  ;;  %v2122_v17 = vld [vmem:[#allocation13 + $0x80] sm:$0xff] }
 0x13d   :  { %5885 = vmatprep.subr.bf16.mxu1 %v5884_v33 }
 0x13e   :  { %5147 = vmatmul.mubr.msk.f32.gmra.mrb[4].mxu0 %vm286_vm0, %v7302_v30  ;;  %5887 = vmatpush3.bf16.msra.mxu1 %v5884_v33  ;;  %v1320_v33 = vld [vmem:[#allocation8 + $0xd0] sm:$0xff] }
 0x13f   :  { %5149 = vmatprep.mubr.msk.f32.mxu0 %vm286_vm0, %v7309_v31  ;;  %5871 = vmatpush3.bf16.msra.mxu0 %v5868_v24  ;;  %v1147_v24 = vld [vmem:[#allocation8 + $0xb0] sm:$0xff] }
 0x140   :  { %5873 = vmatprep.subr.bf16.mxu0 %v5872_v32  ;;  %5166 = vmatmul.mubr.msk.f32.gmra.mrb[6].mxu1 %vm286_vm0, %v7320_v34  ;;  %v5920_v26 = vpack.c.bf16 %v1148_v25, %v1147_v24  ;;  %v1533_v25 = vld [vmem:[%s7697_s9 + $0x20] sm:$0xff] }
 0x141   :  { %5889 = vmatprep.subr.bf16.mxu1 %v5888_v38 }
 0x142   :  { %5150 = vmatmul.mubr.msk.f32.gmra.mrb[6].mxu0 %vm286_vm0, %v7320_v34  ;;  %5891 = vmatpush3.bf16.msra.mxu1 %v5888_v38  ;;  %v1323_v38 = vld [vmem:[#allocation8 + $0xe8] sm:$0xff] }
 0x143   :  { %5184 = vmatprep.mubr.msk.f32.mxu0 %vm530_vm1, %v7224_v2  ;;  %5875 = vmatpush3.bf16.msra.mxu0 %v5872_v32  ;;  %v5924_v32 = vpack.c.bf16 %v1319_v29, %v1318_v28  ;;  %v1536_v28 = vld [vmem:[%s7697_s9 + $0x38] sm:$0xff] }
 0x144   :  { %5187 = vmatprep.subr.mxu0 %v521_v35 }
 0x146   :  { %5185 = vmatmul.mubr.msk.f32.vlgmr.msra.gmra.mrb[8].mxu0 %vm530_vm1, %v7228_v4 }
 0x147   :  { %5188 = vmatpush3.msra.mxu0 %v521_v35  ;;  %5189 = vmatprep.mubr.msk.f32.mxu0 %vm612_vm2, %v7217_v0  ;;  %v1321_v35 = vld [vmem:[#allocation8 + $0xd8] sm:$0xff] }
 0x148   :  { %5192 = vmatprep.subr.mxu0 %v703_v39  ;;  %v5928_v36 = vpack.c.bf16 %v1321_v35, %v1320_v33  ;;  %v1702_v33 = vld [vmem:[#allocation11] sm:$0xff] }
 0x149   :  { %v1780_v35 = vld [vmem:[#allocation13] sm:$0xff] }
 0x14e   :  { %5190 = vmatmul.mubr.msk.f32.vlgmr.msra.gmra.mrb[8].mxu0 %vm612_vm2, %v7222_v1 }
 0x14f   :  { %5193 = vmatpush3.msra.mxu0 %v703_v39  ;;  %v5932_v39 = vpack.c.bf16 %v1323_v38, %v1322_v37  ;;  %v1782_v38 = vld [vmem:[#allocation13 + $0x10] sm:$0xff] }
 0x150   :  { %5216 = vmatprep.subr.mxu0 %v879_v40 }
 0x205   :  { %v5158_v45 = vpop.f32.mrb[0].mxu1 }
 0x206   :  { %v482_v47 = vpop.f32.mrb[1].mxu1 }
 0x207   :  { %5213 = vmatprep.mubr.msk.f32.mxu1 %vm530_vm1, %v482_v47 }
 0x208   :  { %5214 = vmatmul.mubr.msk.f32.vlgmr.msra.gmra.mrb[8].mxu1 %vm530_vm1, %v5158_v45  ;;  %v4630_v45 = vld [vmem:[%s7736_s20] ss:$0 sm:$0xff] }
 0x209   :  { %v7340_v43 = vpop.f32.mrb[0].mxu0  ;;  %v5161_v53 = vpop.f32.mrb[2].mxu1  ;;  %5292 = vmatprep.mubr.msk.f32.mxu1 %vm286_vm0, %v7233_v5 }
 0x20a   :  { %v7342_v44 = vpop.f32.mrb[1].mxu0  ;;  %v492_v56 = vpop.f32.mrb[3].mxu1 }
 0x20b   :  { %5194 = vmatprep.mubr.msk.f32.mxu0 %vm612_vm2, %v7342_v44 }
 0x20c   :  { %5195 = vmatmul.mubr.msk.f32.vlgmr.msra.gmra.mrb[8].mxu0 %vm612_vm2, %v7340_v43 }
 0x20d   :  { %v7349_v50 = vpop.f32.mrb[2].mxu0  ;;  %5217 = vmatpush3.msra.mxu0 %v879_v40  ;;  %v5164_v60 = vpop.f32.mrb[4].mxu1  ;;  %v1324_v40 = vld [vmem:[#allocation8 + $0xf0] sm:$0xff] }
 0x20e   :  { %v7352_v51 = vpop.f32.mrb[3].mxu0  ;;  %5893 = vmatprep.subr.bf16.mxu0 %v5892_v46  ;;  %v502_v63 = vpop.f32.mrb[5].mxu1  ;;  %v5936_v42 = vpack.c.bf16 %v1325_v41, %v1324_v40  ;;  %v1784_v41 = vld [vmem:[#allocation13 + $0x20] sm:$0xff] }
 0x20f   :  { %5218 = vmatprep.mubr.msk.f32.mxu0 %vm612_vm2, %v7352_v51 }
 0x210   :  { %5219 = vmatmul.mubr.msk.f32.vlgmr.msra.gmra.mrb[10].mxu0 %vm612_vm2, %v7349_v50 }
 0x211   :  { %5895 = vmatpush3.bf16.msra.mxu0 %v5892_v46  ;;  %5237 = vmatprep.mubr.msk.f32.mxu0 %vm530_vm1, %v492_v56  ;;  %v7361_v57 = vpop.f32.mrb[4].mxu0 }
 0x212   :  { %5897 = vmatprep.subr.bf16.mxu0 %v5896_v52  ;;  %v7363_v59 = vpop.f32.mrb[5].mxu0 }
 0x213   :  { %v5167_v9 = vpop.f32.mrb[6].mxu1 }
 0x214   :  { %v512_v10 = vpop.f32.mrb[7].mxu1 }
 0x215   :  { %5899 = vmatpush3.bf16.msra.mxu0 %v5896_v52  ;;  %v7365_v3 = vpop.f32.mrb[6].mxu0 }
 0x216   :  { %5901 = vmatprep.subr.bf16.mxu0 %v5900_v58  ;;  %v7367_v8 = vpop.f32.mrb[7].mxu0 }
 0x219   :  { %5903 = vmatpush3.bf16.msra.mxu0 %v5900_v58 }
 0x21a   :  { %5905 = vmatprep.subr.bf16.mxu0 %v5904_v6 }
 0x21d   :  { %5907 = vmatpush3.bf16.msra.mxu0 %v5904_v6 }
 0x21e   :  { %5240 = vmatprep.subr.mxu0 %v1056_v12 }
 0x220   :  { %5238 = vmatmul.mubr.msk.f32.vlgmr.msra.gmra.mrb[10].mxu0 %vm530_vm1, %v5161_v53 }
 0x221   :  { %5241 = vmatpush3.msra.mxu0 %v1056_v12  ;;  %5242 = vmatprep.mubr.msk.f32.mxu0 %vm612_vm2, %v7363_v59 }
 0x222   :  { %5909 = vmatprep.subr.bf16.mxu0 %v5908_v15 }
 0x228   :  { %5243 = vmatmul.mubr.msk.f32.vlgmr.msra.gmra.mrb[10].mxu0 %vm612_vm2, %v7361_v57 }
 0x229   :  { %5911 = vmatpush3.bf16.msra.mxu0 %v5908_v15  ;;  %5261 = vmatprep.mubr.msk.f32.mxu0 %vm530_vm1, %v502_v63 }
 0x22a   :  { %5913 = vmatprep.subr.bf16.mxu0 %v5912_v18 }
 0x22d   :  { %5915 = vmatpush3.bf16.msra.mxu0 %v5912_v18 }
 0x22e   :  { %5917 = vmatprep.subr.bf16.mxu0 %v5916_v22 }
 0x231   :  { %5919 = vmatpush3.bf16.msra.mxu0 %v5916_v22  ;;  %v1531_v22 = vld [vmem:[%s7697_s9 + $0x10] sm:$0xff] }
 0x232   :  { %5921 = vmatprep.subr.bf16.mxu0 %v5920_v26 }
 0x235   :  { %5923 = vmatpush3.bf16.msra.mxu0 %v5920_v26 }
 0x236   :  { %5264 = vmatprep.subr.mxu0 %v1233_v27 }
 0x238   :  { %5262 = vmatmul.mubr.msk.f32.vlgmr.msra.gmra.mrb[10].mxu0 %vm530_vm1, %v5164_v60 }
 0x239   :  { %5265 = vmatpush3.msra.mxu0 %v1233_v27  ;;  %5266 = vmatprep.mubr.msk.f32.mxu0 %vm612_vm2, %v7367_v8  ;;  %v1535_v27 = vld [vmem:[%s7697_s9 + $0x30] sm:$0xff] }
 0x23a   :  { %5925 = vmatprep.subr.bf16.mxu0 %v5924_v32  ;;  %v5956_v29 = vpack.c.bf16 %v1536_v28, %v1535_v27  ;;  %v2214_v27 = vld [vmem:[#allocation11 + $0x18] sm:$0xff]  ;;  %v2293_v28 = vld [vmem:[#allocation13 + $0xc0] sm:$0xff] }
 0x240   :  { %5267 = vmatmul.mubr.msk.f32.vlgmr.msra.gmra.mrb[10].mxu0 %vm612_vm2, %v7365_v3 }
 0x241   :  { %5927 = vmatpush3.bf16.msra.mxu0 %v5924_v32  ;;  %5285 = vmatprep.mubr.msk.f32.mxu0 %vm530_vm1, %v512_v10  ;;  %v1528_v32 = vld [vmem:[#allocation10] sm:$0xff] }
 0x242   :  { %5929 = vmatprep.subr.bf16.mxu0 %v5928_v36 }
 0x245   :  { %5931 = vmatpush3.bf16.msra.mxu0 %v5928_v36  ;;  %v1781_v36 = vld [vmem:[#allocation13 + $0x8] sm:$0xff] }
 0x246   :  { %5933 = vmatprep.subr.bf16.mxu0 %v5932_v39  ;;  %v5960_v37 = vpack.c.bf16 %v1781_v36, %v1780_v35  ;;  %v2297_v36 = vld [vmem:[#allocation13 + $0xe0] sm:$0xff] }
 0x249   :  { %5935 = vmatpush3.bf16.msra.mxu0 %v5932_v39  ;;  %v1783_v39 = vld [vmem:[#allocation13 + $0x18] sm:$0xff] }
 0x24a   :  { %5937 = vmatprep.subr.bf16.mxu0 %v5936_v42  ;;  %v5964_v40 = vpack.c.bf16 %v1783_v39, %v1782_v38  ;;  %v2299_v39 = vld [vmem:[#allocation13 + $0xf0] sm:$0xff] }
 0x24d   :  { %5939 = vmatpush3.bf16.msra.mxu0 %v5936_v42  ;;  %v1785_v42 = vld [vmem:[#allocation13 + $0x28] sm:$0xff] }
 0x250   :  { %5286 = vmatmul.mubr.msk.f32.vlgmr.msra.gmra.mrb[10].mxu0 %vm530_vm1, %v5167_v9 }
 0x251   :  { %5428 = vmatprep.mubr.msk.f32.mxu0 %vm286_vm0, %v7233_v5 }
 0x2db   :  { %v5215_v49 = vpop.f32.mrb[8].mxu1 }
 0x2dc   :  { %v867_v53 = vpop.f32.mrb[9].mxu1 }
 0x2df   :  { %v5196_v46 = vpop.f32.mrb[8].mxu0 }
 0x2e0   :  { %v6356_v47 = vadd.f32 %v5196_v46, %v4630_v45  ;;  %v776_v48 = vpop.f32.mrb[9].mxu0  ;;  %v1787_v46 = vld [vmem:[#allocation13 + $0x38] sm:$0xff] }
 0x2e1   :  { %v6359_v52 = vadd.f32 %v4630_v45, %v776_v48  ;;  %v1786_v45 = vld [vmem:[#allocation13 + $0x30] sm:$0xff]  ;;  %v1952_v48 = vld [vmem:[#allocation13 + $0x48] sm:$0xff] }
 0x2e2   :  { %v6357_v54 = vadd.f32 %v6356_v47, %v5215_v49  ;;  %v1951_v47 = vld [vmem:[#allocation13 + $0x40] sm:$0xff] }
 0x2e3   :  { %v6360_v55 = vadd.f32 %v6359_v52, %v867_v53  ;;  %v5976_v53 = vpack.c.bf16 %v1952_v48, %v1951_v47  ;;  %v2640_v48 = vld [vmem:[#allocation16 + $0x18] sm:$0xff] }
 0x323   :  { %v5287_v56 = vpop.f32.mrb[10].mxu0 }
 0x324   :  { %v6358_v58 = vadd.f32 %v6357_v54, %v5287_v56  ;;  %v1398_v60 = vpop.f32.mrb[11].mxu0  ;;  %v1954_v56 = vld [vmem:[#allocation13 + $0x58] sm:$0xff] }
 0x325   :  { %v6361_v61 = vadd.f32 %v6360_v55, %v1398_v60  ;;  %v1953_v55 = vld [vmem:[#allocation13 + $0x50] sm:$0xff] }
 0x326   :  { %v4648_v62 = vmul.f32 -1.442695, %v6358_v58  ;;  %v5980_v60 = vpack.c.bf16 %v1954_v56, %v1953_v55  ;;  %v2643_v56 = vld [vmem:[#allocation16 + $0x30] sm:$0xff] }
 0x327   :  { %v4647_v63 = vmul.f32 -1.442695, %v6361_v61 }
 0x328   :  { %6455 = vpow2.f32 %v4648_v62  ;;  %v1955_v62 = vld [vmem:[#allocation13 + $0x60] sm:$0xff] }
 0x329   :  { %6457 = vpow2.f32 %v4647_v63  ;;  %v1956_v63 = vld [vmem:[#allocation13 + $0x68] sm:$0xff] }
 0x332   :  { %v6456_v6 = vpop.eup %6455 }
 0x333   :  { %v6458_v9 = vpop.eup %6457  ;;  %v1416_v10 = vadd.f32 1.0, %v6456_v6 }
 0x334   :  { %v1415_v12 = vadd.f32 1.0, %v6458_v9 }
 0x335   :  { %6459 = vrcp.f32 %v1416_v10  ;;  %v1957_v10 = vld [vmem:[#allocation13 + $0x70] sm:$0xff] }
 0x336   :  { %6461 = vrcp.f32 %v1415_v12  ;;  %v1958_v12 = vld [vmem:[#allocation13 + $0x78] sm:$0xff] }
 0x33f   :  { %v7387_v13 = vpop.eup %6459 }
 0x340   :  { %v7389_v14 = vpop.eup %6461  ;;  %v1422_v15 = vmul.f32 %v7387_v13, %v7228_v4  ;;  %v1532_v4 = vld [vmem:[%s7697_s9 + $0x18] sm:$0xff] }
 0x341   :  { %v1421_v18 = vmul.f32 %v7389_v14, %v7224_v2  ;;  %v5948_v24 = vpack.c.bf16 %v1532_v4, %v1531_v22  ;;  %v1534_v2 = vld [vmem:[%s7697_s9 + $0x28] sm:$0xff]  ;;  %v2126_v4 = vld [vmem:[#allocation13 + $0xa0] sm:$0xff] }
 0x342   :  { %v5952_v26 = vpack.c.bf16 %v1534_v2, %v1533_v25  ;;  %v2128_v2 = vld [vmem:[#allocation13 + $0xb0] sm:$0xff] }
 0x343   :  { %v5940_v19 = vpack.c.bf16 %v1422_v15, %v1421_v18 }
 0x345   :  { %5941 = vmatprep.subr.bf16.mxu1 %v5940_v19 }
 0x346   :  { %5943 = vmatpush3.bf16.msra.mxu1 %v5940_v19  ;;  %v2124_v19 = vld [vmem:[#allocation13 + $0x90] sm:$0xff] }
 0x347   :  { %5945 = vmatprep.subr.bf16.mxu1 %v5944_v21 }
 0x349   :  { %5293 = vmatmul.mubr.msk.f32.vlgmr.msra.gmra.mrb[10].mxu1 %vm286_vm0, %v7244_v7 }
 0x34a   :  { %5947 = vmatpush3.bf16.msra.mxu1 %v5944_v21  ;;  %5295 = vmatprep.mubr.msk.f32.mxu1 %vm286_vm0, %v7258_v11  ;;  %v2125_v21 = vld [vmem:[#allocation13 + $0x98] sm:$0xff] }
 0x34b   :  { %5949 = vmatprep.subr.bf16.mxu1 %v5948_v24  ;;  %v5996_v22 = vpack.c.bf16 %v2125_v21, %v2124_v19  ;;  %v2387_v21 = vpop.permute.xlu0 %2386 }
 0x34d   :  { %5296 = vmatmul.mubr.msk.f32.gmra.mrb[12].mxu1 %vm286_vm0, %v7278_v20 }
 0x34e   :  { %5951 = vmatpush3.bf16.msra.mxu1 %v5948_v24  ;;  %5298 = vmatprep.mubr.msk.f32.mxu1 %vm286_vm0, %v7285_v23  ;;  %v2127_v24 = vld [vmem:[#allocation13 + $0xa8] sm:$0xff] }
 0x34f   :  { %5953 = vmatprep.subr.bf16.mxu1 %v5952_v26  ;;  %v6000_v25 = vpack.c.bf16 %v2127_v24, %v2126_v4  ;;  %v2392_v24 = vmul.f32 %v7389_v14, %v2387_v21  ;;  %v3004_v21 = vld [vmem:[#allocation17 + $0x78] sm:$0xff] }
 0x351   :  { %5299 = vmatmul.mubr.msk.f32.gmra.mrb[14].mxu1 %vm286_vm0, %v7302_v30 }
 0x352   :  { %5955 = vmatpush3.bf16.msra.mxu1 %v5952_v26  ;;  %5301 = vmatprep.mubr.msk.f32.mxu1 %vm286_vm0, %v7309_v31  ;;  %v2129_v26 = vld [vmem:[#allocation13 + $0xb8] sm:$0xff] }
 0x353   :  { %5957 = vmatprep.subr.bf16.mxu1 %v5956_v29 }
 0x355   :  { %5302 = vmatmul.mubr.msk.f32.gmra.mrb[16].mxu1 %vm286_vm0, %v7320_v34 }
 0x356   :  { %5959 = vmatpush3.bf16.msra.mxu1 %v5956_v29  ;;  %5320 = vmatprep.mubr.msk.f32.mxu1 %vm530_vm1, %v1421_v18  ;;  %v2123_v18 = vld [vmem:[#allocation13 + $0x88] sm:$0xff] }
 0x357   :  { %5323 = vmatprep.subr.mxu1 %v1528_v32  ;;  %v2294_v29 = vld [vmem:[#allocation13 + $0xc8] sm:$0xff] }
 0x359   :  { %5321 = vmatmul.mubr.msk.f32.vlgmr.msra.gmra.mrb[18].mxu1 %vm530_vm1, %v1422_v15  ;;  %v5988_v15 = vpack.c.bf16 %v1958_v12, %v1957_v10  ;;  %v7475_v10 = vld [vmem:[#allocation2 + $0x18] sm:$0xff] }
 0x35a   :  { %5324 = vmatpush3.msra.mxu1 %v1528_v32  ;;  %5325 = vmatprep.mubr.msk.f32.mxu1 %vm612_vm2, %v7217_v0  ;;  %v5968_v0 = vpack.c.bf16 %v1785_v42, %v1784_v41  ;;  %v6008_v32 = vpack.c.bf16 %v2294_v29, %v2293_v28 }
 0x35b   :  { %5328 = vmatprep.subr.mxu1 %v1702_v33 }
 0x361   :  { %5326 = vmatmul.mubr.msk.f32.vlgmr.msra.gmra.mrb[18].mxu1 %vm612_vm2, %v7222_v1  ;;  %v5972_v1 = vpack.c.bf16 %v1787_v46, %v1786_v45  ;;  %v2637_v46 = vld [vmem:[#allocation16] sm:$0xff] }
 0x362   :  { %5330 = vmatprep.mubr.msk.f32.mxu1 %vm612_vm2, %v7342_v44  ;;  %5329 = vmatpush3.msra.mxu1 %v1702_v33  ;;  %v1872_v44 = vld [vmem:[#allocation11 + $0x8] sm:$0xff]  ;;  %v2296_v33 = vld [vmem:[#allocation13 + $0xd8] sm:$0xff] }
 0x363   :  { %5961 = vmatprep.subr.bf16.mxu1 %v5960_v37 }
 0x369   :  { %5331 = vmatmul.mubr.msk.f32.vlgmr.msra.gmra.mrb[18].mxu1 %vm612_vm2, %v7340_v43 }
 0x36a   :  { %5963 = vmatpush3.bf16.msra.mxu1 %v5960_v37  ;;  %v2298_v37 = vld [vmem:[#allocation13 + $0xe8] sm:$0xff] }
 0x36b   :  { %5965 = vmatprep.subr.bf16.mxu1 %v5964_v40  ;;  %v6016_v38 = vpack.c.bf16 %v2298_v37, %v2297_v36  ;;  %v2816_v36 = vld [vmem:[#allocation17 + $0x10] sm:$0xff] }
 0x36e   :  { %5967 = vmatpush3.bf16.msra.mxu1 %v5964_v40  ;;  %v2300_v40 = vld [vmem:[#allocation13 + $0xf8] sm:$0xff] }
 0x36f   :  { %5969 = vmatprep.subr.bf16.mxu1 %v5968_v0 }
 0x372   :  { %5971 = vmatpush3.bf16.msra.mxu1 %v5968_v0 }
 0x373   :  { %5973 = vmatprep.subr.bf16.mxu1 %v5972_v1 }
 0x376   :  { %5975 = vmatpush3.bf16.msra.mxu1 %v5972_v1  ;;  %v2638_v1 = vld [vmem:[#allocation16 + $0x8] sm:$0xff] }
 0x377   :  { %5352 = vmatprep.subr.mxu1 %v1872_v44  ;;  %v6032_v47 = vpack.c.bf16 %v2638_v1, %v2637_v46  ;;  %v2908_v1 = vld [vmem:[#allocation19 + $0x18] sm:$0xff] }
 0x41c   :  { %v5294_v49 = vpop.f32.mrb[10].mxu1 }
 0x41d   :  { %v1489_v52 = vpop.f32.mrb[11].mxu1 }
 0x41e   :  { %5349 = vmatprep.mubr.msk.f32.mxu1 %vm530_vm1, %v1489_v52  ;;  %v2641_v52 = vld [vmem:[#allocation16 + $0x20] sm:$0xff] }
 0x41f   :  { %5350 = vmatmul.mubr.msk.f32.vlgmr.msra.gmra.mrb[18].mxu1 %vm530_vm1, %v5294_v49 }
 0x420   :  { %5354 = vmatprep.mubr.msk.f32.mxu1 %vm612_vm2, %v7352_v51  ;;  %5353 = vmatpush3.msra.mxu1 %v1872_v44  ;;  %v5297_v43 = vpop.f32.mrb[12].mxu1  ;;  %v5984_v51 = vpack.c.bf16 %v1956_v63, %v1955_v62  ;;  %v2639_v44 = vld [vmem:[#allocation16 + $0x10] sm:$0xff]  ;;  %v2629_v62 = vld [vmem:[#allocation14] sm:$0xff]  ;;  %v2630_v63 = vld [vmem:[#allocation14 + $0x8] sm:$0xff] }
 0x421   :  { %5977 = vmatprep.subr.bf16.mxu1 %v5976_v53  ;;  %v1499_v54 = vpop.f32.mrb[13].mxu1  ;;  %v6036_v49 = vpack.c.bf16 %v2640_v48, %v2639_v44 }
 0x424   :  { %v5300_v58 = vpop.f32.mrb[14].mxu1 }
 0x425   :  { %v1509_v61 = vpop.f32.mrb[15].mxu1 }
 0x427   :  { %5355 = vmatmul.mubr.msk.f32.vlgmr.msra.gmra.mrb[18].mxu1 %vm612_vm2, %v7349_v50  ;;  %v5992_v50 = vpack.c.bf16 %v2123_v18, %v2122_v17  ;;  %v2635_v18 = vld [vmem:[#allocation14 + $0x30] sm:$0xff] }
 0x428   :  { %5979 = vmatpush3.bf16.msra.mxu1 %v5976_v53  ;;  %5373 = vmatprep.mubr.msk.f32.mxu1 %vm530_vm1, %v1499_v54  ;;  %v7450_v6 = vpop.f32.mrb[16].mxu1  ;;  %v2642_v53 = vld [vmem:[#allocation16 + $0x28] sm:$0xff] }
 0x429   :  { %5981 = vmatprep.subr.bf16.mxu1 %v5980_v60  ;;  %v1519_v9 = vpop.f32.mrb[17].mxu1  ;;  %v6040_v55 = vpack.c.bf16 %v2642_v53, %v2641_v52  ;;  %v2912_v52 = vld [vmem:[#allocation19 + $0x38] sm:$0xff] }
 0x42c   :  { %5983 = vmatpush3.bf16.msra.mxu1 %v5980_v60 }
 0x42d   :  { %5985 = vmatprep.subr.bf16.mxu1 %v5984_v51 }
 0x430   :  { %5987 = vmatpush3.bf16.msra.mxu1 %v5984_v51  ;;  %v2631_v51 = vld [vmem:[#allocation14 + $0x10] sm:$0xff] }
 0x431   :  { %5989 = vmatprep.subr.bf16.mxu1 %v5988_v15 }
 0x434   :  { %5991 = vmatpush3.bf16.msra.mxu1 %v5988_v15  ;;  %v2633_v15 = vld [vmem:[#allocation14 + $0x20] sm:$0xff] }
 0x435   :  { %5376 = vmatprep.subr.mxu1 %v2043_v16 }
 0x437   :  { %5374 = vmatmul.mubr.msk.f32.vlgmr.msra.gmra.mrb[18].mxu1 %vm530_vm1, %v5297_v43  ;;  %v7469_v43 = vld [vmem:[#allocation2 + $0x10] sm:$0xff] }
 0x438   :  { %5378 = vmatprep.mubr.msk.f32.mxu1 %vm612_vm2, %v7363_v59  ;;  %5377 = vmatpush3.msra.mxu1 %v2043_v16  ;;  %v6004_v59 = vpack.c.bf16 %v2129_v26, %v2128_v2  ;;  %v2634_v16 = vld [vmem:[#allocation14 + $0x28] sm:$0xff]  ;;  %v2389_v2 = vpop.permute.xlu0 %2388 }
 0x439   :  { %5993 = vmatprep.subr.bf16.mxu1 %v5992_v50  ;;  %v6056_v17 = vpack.c.bf16 %v2634_v16, %v2633_v15  ;;  %v2393_v28 = vmul.f32 %v7387_v13, %v2389_v2  ;;  %v3001_v15 = vld [vmem:[#allocation17 + $0x60] sm:$0xff]  ;;  %v3002_v16 = vld [vmem:[#allocation17 + $0x68] sm:$0xff] }
 0x43a   :  { %v3090_v2 = vld [vmem:[#allocation19 + $0x48] sm:$0xff] }
 0x43f   :  { %5379 = vmatmul.mubr.msk.f32.vlgmr.msra.gmra.mrb[18].mxu1 %vm612_vm2, %v7361_v57  ;;  %v2295_v57 = vld [vmem:[#allocation13 + $0xd0] sm:$0xff] }
 0x440   :  { %5995 = vmatpush3.bf16.msra.mxu1 %v5992_v50  ;;  %5397 = vmatprep.mubr.msk.f32.mxu1 %vm530_vm1, %v1509_v61  ;;  %v6012_v35 = vpack.c.bf16 %v2296_v33, %v2295_v57  ;;  %v2636_v50 = vld [vmem:[#allocation14 + $0x38] sm:$0xff]  ;;  %v2815_v57 = vld [vmem:[#allocation17 + $0x8] sm:$0xff] }
 0x441   :  { %5997 = vmatprep.subr.bf16.mxu1 %v5996_v22  ;;  %v6060_v19 = vpack.c.bf16 %v2636_v50, %v2635_v18  ;;  %v6104_v18 = vpack.c.bf16 %v3002_v16, %v3001_v15  ;;  %v3368_v15 = vld [vmem:[#allocation17 + $0xd8] sm:$0xff] }
 0x444   :  { %5999 = vmatpush3.bf16.msra.mxu1 %v5996_v22  ;;  %v2394_v22 = vsub.f32 1.0, %v7389_v14  ;;  %v2814_v14 = vld [vmem:[#allocation17] sm:$0xff] }
 0x445   :  { %6001 = vmatprep.subr.bf16.mxu1 %v6000_v25  ;;  %v6064_v33 = vpack.c.bf16 %v2815_v57, %v2814_v14  ;;  %v3093_v14 = vld [vmem:[#allocation19 + $0x60] sm:$0xff]  ;;  %v3094_v57 = vld [vmem:[#allocation19 + $0x68] sm:$0xff] }
 0x448   :  { %6003 = vmatpush3.bf16.msra.mxu1 %v6000_v25 }
 0x449   :  { %6005 = vmatprep.subr.bf16.mxu1 %v6004_v59 }
 0x44c   :  { %6007 = vmatpush3.bf16.msra.mxu1 %v6004_v59  ;;  %v2395_v59 = vsub.f32 1.0, %v7387_v13  ;;  %v2817_v13 = vld [vmem:[#allocation17 + $0x18] sm:$0xff] }
 0x44d   :  { %5400 = vmatprep.subr.mxu1 %v2214_v27  ;;  %v6068_v37 = vpack.c.bf16 %v2817_v13, %v2816_v36  ;;  %v3095_v36 = vld [vmem:[#allocation19 + $0x70] sm:$0xff]  ;;  %v3096_v13 = vld [vmem:[#allocation19 + $0x78] sm:$0xff] }
 0x44f   :  { %5398 = vmatmul.mubr.msk.f32.vlgmr.msra.gmra.mrb[18].mxu1 %vm530_vm1, %v5300_v58  ;;  %v2644_v58 = vld [vmem:[#allocation16 + $0x38] sm:$0xff] }
 0x450   :  { %5402 = vmatprep.mubr.msk.f32.mxu1 %vm612_vm2, %v7367_v8  ;;  %5401 = vmatpush3.msra.mxu1 %v2214_v27  ;;  %v6020_v8 = vpack.c.bf16 %v2300_v40, %v2299_v39  ;;  %v6044_v61 = vpack.c.bf16 %v2644_v58, %v2643_v56  ;;  %v2818_v39 = vld [vmem:[#allocation17 + $0x20] sm:$0xff]  ;;  %v2819_v40 = vld [vmem:[#allocation17 + $0x28] sm:$0xff] }
 0x451   :  { %6009 = vmatprep.subr.bf16.mxu1 %v6008_v32  ;;  %v2997_v56 = vld [vmem:[#allocation17 + $0x40] sm:$0xff]  ;;  %v2998_v58 = vld [vmem:[#allocation17 + $0x48] sm:$0xff] }
 0x457   :  { %5403 = vmatmul.mubr.msk.f32.vlgmr.msra.gmra.mrb[18].mxu1 %vm612_vm2, %v7365_v3  ;;  %v4661_v3 = vld [vmem:[%s7700_s12] ss:$0 sm:$0xff] }
 0x458   :  { %6011 = vmatpush3.bf16.msra.mxu1 %v6008_v32  ;;  %5421 = vmatprep.mubr.msk.f32.mxu1 %vm530_vm1, %v1519_v9  ;;  %v2632_v9 = vld [vmem:[#allocation14 + $0x18] sm:$0xff] }
 0x459   :  { %6013 = vmatprep.subr.bf16.mxu1 %v6012_v35  ;;  %v6052_v12 = vpack.c.bf16 %v2632_v9, %v2631_v51 }
 0x45c   :  { %6015 = vmatpush3.bf16.msra.mxu1 %v6012_v35 }
 0x45d   :  { %6017 = vmatprep.subr.bf16.mxu1 %v6016_v38 }
 0x460   :  { %6019 = vmatpush3.bf16.msra.mxu1 %v6016_v38 }
 0x461   :  { %6021 = vmatprep.subr.bf16.mxu1 %v6020_v8 }
 0x464   :  { %6023 = vmatpush3.bf16.msra.mxu1 %v6020_v8 }
 0x465   :  { %6033 = vmatprep.subr.bf16.mxu1 %v6032_v47 }
 0x467   :  { %5422 = vmatmul.mubr.msk.f32.vlgmr.msra.gmra.mrb[18].mxu1 %vm530_vm1, %v7450_v6  ;;  %v6048_v6 = vpack.c.bf16 %v2630_v63, %v2629_v62  ;;  %v6096_v62 = vpack.c.bf16 %v2998_v58, %v2997_v56  ;;  %v2999_v63 = vld [vmem:[#allocation17 + $0x50] sm:$0xff] }
 0x468   :  { %5472 = vmatprep.mubr.msk.f32.mxu1 %vm530_vm1, %v7469_v43  ;;  %6035 = vmatpush3.bf16.msra.mxu1 %v6032_v47  ;;  %v2910_v47 = vld [vmem:[#allocation19 + $0x28] sm:$0xff]  ;;  %v3279_v58 = vld [vmem:[#allocation19 + $0xb0] sm:$0xff] }
 0x469   :  { %6037 = vmatprep.subr.bf16.mxu1 %v6036_v49 }
 0x46c   :  { %6039 = vmatpush3.bf16.msra.mxu1 %v6036_v49  ;;  %v2911_v49 = vld [vmem:[#allocation19 + $0x30] sm:$0xff] }
 0x46d   :  { %6041 = vmatprep.subr.bf16.mxu1 %v6040_v55 }
 0x470   :  { %6043 = vmatpush3.bf16.msra.mxu1 %v6040_v55  ;;  %v6092_v55 = vpack.c.bf16 %v2912_v52, %v2911_v49  ;;  %v3277_v52 = vld [vmem:[#allocation19 + $0xa0] sm:$0xff] }
 0x471   :  { %6045 = vmatprep.subr.bf16.mxu1 %v6044_v61 }
 0x474   :  { %6047 = vmatpush3.bf16.msra.mxu1 %v6044_v61 }
 0x475   :  { %6049 = vmatprep.subr.bf16.mxu1 %v6048_v6 }
 0x477   :  { %5473 = vmatmul.mubr.msk.f32.vlgmr.msra.gmra.mrb[20].mxu1 %vm530_vm1, %v7475_v10 }
 0x478   :  { %6051 = vmatpush3.bf16.msra.mxu1 %v6048_v6  ;;  %v3000_v6 = vld [vmem:[#allocation17 + $0x58] sm:$0xff] }
 0x479   :  { %6053 = vmatprep.subr.bf16.mxu1 %v6052_v12 }
 0x47c   :  { %6055 = vmatpush3.bf16.msra.mxu1 %v6052_v12  ;;  %v6100_v12 = vpack.c.bf16 %v3000_v6, %v2999_v63  ;;  %v3365_v6 = vld [vmem:[#allocation17 + $0xc0] sm:$0xff] }
 0x47d   :  { %6057 = vmatprep.subr.bf16.mxu1 %v6056_v17 }
 0x480   :  { %6059 = vmatpush3.bf16.msra.mxu1 %v6056_v17 }
 0x481   :  { %6061 = vmatprep.subr.bf16.mxu1 %v6060_v19 }
 0x484   :  { %6063 = vmatpush3.bf16.msra.mxu1 %v6060_v19  ;;  %v3003_v19 = vld [vmem:[#allocation17 + $0x70] sm:$0xff] }
 0x485   :  { %6065 = vmatprep.subr.bf16.mxu1 %v6064_v33 }
 0x53a   :  { %v5423_v41 = vpop.f32.mrb[18].mxu1 }
 0x53b   :  { %v2373_v42 = vpop.f32.mrb[19].mxu1  ;;  %v6362_v45 = vadd.f32 %v5423_v41, %v4661_v3  ;;  %v6072_v41 = vpack.c.bf16 %v2819_v40, %v2818_v39  ;;  %v3181_v39 = vld [vmem:[#allocation17 + $0x80] sm:$0xff]  ;;  %v3182_v40 = vld [vmem:[#allocation17 + $0x88] sm:$0xff] }
 0x53c   :  { %v6363_v0 = vadd.f32 %v4661_v3, %v2373_v42  ;;  %v6028_v3 = vpack.c.bf16 %v7475_v10, %v7469_v43  ;;  %v2820_v42 = vld [vmem:[#allocation17 + $0x30] sm:$0xff] }
 0x53e   :  { %6463 = vtanh.f32 %v6363_v0  ;;  %v2821_v0 = vld [vmem:[#allocation17 + $0x38] sm:$0xff] }
 0x53f   :  { %6465 = vtanh.f32 %v6362_v45  ;;  %v6076_v45 = vpack.c.bf16 %v2821_v0, %v2820_v42  ;;  %v3185_v0 = vld [vmem:[#allocation17 + $0xa0] sm:$0xff] }
 0x548   :  { %v6464_v54 = vpop.eup %6463 }
 0x549   :  { %2398 = vrot.lane.b32.xlu1 %v6464_v54, %s6873_s2  ;;  %v6466_v60 = vpop.eup %6465 }
 0x54d   :  { %2400 = vrot.lane.b32.xlu1 %v6466_v60, %s6873_s2 }
 0x5bb   :  { %v2399_v4 = vpop.permute.xlu1 %2398 }
 0x5bc   :  { %v2404_v25 = vmul.f32 %v2399_v4, %v2394_v22  ;;  %v6108_v4 = vpack.c.bf16 %v3004_v21, %v3003_v19  ;;  %v3371_v19 = vld [vmem:[#allocation17 + $0xf0] sm:$0xff]  ;;  %v3372_v21 = vld [vmem:[#allocation17 + $0xf8] sm:$0xff] }
 0x5be   :  { %v2406_v26 = vadd.f32 %v2404_v25, %v2392_v24  ;;  %v3089_v25 = vld [vmem:[#allocation19 + $0x40] sm:$0xff] }
 0x5bf   :  { %v2401_v27 = vpop.permute.xlu1 %2400 }
 0x5c0   :  { %v2405_v29 = vmul.f32 %v2401_v27, %v2395_v59  ;;  %2413 = vrot.lane.b32.xlu0 %v2406_v26, %s6873_s2  ;;  %v6112_v59 = vpack.c.bf16 %v3090_v2, %v3089_v25  ;;  %v3458_v25 = vld [vmem:[#allocation19 + $0xc8] sm:$0xff] }
 0x5c2   :  { %v2407_v32 = vadd.f32 %v2405_v29, %v2393_v28  ;;  %v3091_v28 = vld [vmem:[#allocation19 + $0x50] sm:$0xff]  ;;  %v3092_v29 = vld [vmem:[#allocation19 + $0x58] sm:$0xff] }
 0x5c4   :  { %2415 = vrot.lane.b32.xlu1 %v2407_v32, %s6873_s2  ;;  %4560 = vrot.lane.b32.xlu0 %v7469_v43, %s6873_s2  ;;  %v6116_v32 = vpack.c.bf16 %v3092_v29, %v3091_v28  ;;  %v3460_v28 = vld [vmem:[#allocation19 + $0xd8] sm:$0xff]  ;;  %v3461_v29 = vld [vmem:[#allocation19 + $0xe0] sm:$0xff] }
 0x5c8   :  { %4562 = vrot.lane.b32.xlu1 %v7475_v10, %s6873_s2 }
 0x632   :  { %v7489_v35 = vpop.permute.xlu0 %2413 }
 0x633   :  { %5491 = vmatprep.mubr.msk.f32.mxu1 %vm530_vm1, %v7489_v35 }
 0x636   :  { %v7493_v38 = vpop.permute.xlu1 %2415 }
 0x637   :  { %5492 = vmatmul.mubr.msk.f32.vlgmr.msra.gmra.mrb[20].mxu1 %vm530_vm1, %v7493_v38  ;;  %v6024_v8 = vpack.c.bf16 %v7493_v38, %v7489_v35 }
 0x638   :  { %6067 = vmatpush3.bf16.msra.mxu1 %v6064_v33  ;;  %v6120_v33 = vpack.c.bf16 %v3094_v57, %v3093_v14  ;;  %v3463_v57 = vld [vmem:[#allocation19 + $0xf0] sm:$0xff] }
 0x639   :  { %6025 = vmatprep.subr.bf16.mxu0 %v6024_v8  ;;  %6069 = vmatprep.subr.bf16.mxu1 %v6068_v37 }
 0x63a   :  { %6027 = vmatpush3.bf16.msra.mxu0 %v6024_v8  ;;  %v6128_v8 = vpack.c.bf16 %v3182_v40, %v3181_v39 }
 0x63b   :  { %6029 = vmatprep.subr.bf16.mxu0 %v6028_v3 }
 0x63c   :  { %6071 = vmatpush3.bf16.msra.mxu1 %v6068_v37  ;;  %v6124_v37 = vpack.c.bf16 %v3096_v13, %v3095_v36  ;;  %v4698_v13 = vld [vmem:[%s7705_s17] ss:$0 sm:$0xff] }
 0x63d   :  { %5429 = vmatmul.mubr.msk.f32.vlgmr.msra.gmra.mrb[12].mxu0 %vm286_vm0, %v7244_v7  ;;  %6073 = vmatprep.subr.bf16.mxu1 %v6072_v41 }
 0x63e   :  { %5431 = vmatprep.mubr.msk.f32.mxu0 %vm286_vm0, %v7258_v11  ;;  %6031 = vmatpush3.bf16.msra.mxu0 %v6028_v3  ;;  %v3183_v3 = vld [vmem:[#allocation17 + $0x90] sm:$0xff] }
 0x640   :  { %6075 = vmatpush3.bf16.msra.mxu1 %v6072_v41  ;;  %v3184_v41 = vld [vmem:[#allocation17 + $0x98] sm:$0xff] }
 0x641   :  { %5432 = vmatmul.mubr.msk.f32.gmra.mrb[14].mxu0 %vm286_vm0, %v7278_v20  ;;  %6077 = vmatprep.subr.bf16.mxu1 %v6076_v45  ;;  %v6132_v42 = vpack.c.bf16 %v3184_v41, %v3183_v3 }
 0x642   :  { %5434 = vmatprep.mubr.msk.f32.mxu0 %vm286_vm0, %v7285_v23 }
 0x644   :  { %6079 = vmatpush3.bf16.msra.mxu1 %v6076_v45  ;;  %v3186_v45 = vld [vmem:[#allocation17 + $0xa8] sm:$0xff] }
 0x645   :  { %5435 = vmatmul.mubr.msk.f32.gmra.mrb[16].mxu0 %vm286_vm0, %v7302_v30 }
 0x646   :  { %5437 = vmatprep.mubr.msk.f32.mxu0 %vm286_vm0, %v7309_v31 }
 0x649   :  { %5438 = vmatmul.mubr.msk.f32.gmra.mrb[18].mxu0 %vm286_vm0, %v7320_v34 }
 0x64a   :  { %5444 = vmatprep.mubr.msk.f32.mxu0 %vm286_vm0, %v7233_v5 }
 0x64d   :  { %5445 = vmatmul.mubr.msk.f32.vlgmr.msra.gmra.mrb[20].mxu0 %vm286_vm0, %v7244_v7  ;;  %v2905_v7 = vld [vmem:[#allocation19] sm:$0xff] }
 0x64e   :  { %5447 = vmatprep.mubr.msk.f32.mxu0 %vm286_vm0, %v7258_v11  ;;  %v2906_v11 = vld [vmem:[#allocation19 + $0x8] sm:$0xff] }
 0x64f   :  { %v6080_v46 = vpack.c.bf16 %v2906_v11, %v2905_v7  ;;  %v6136_v7 = vpack.c.bf16 %v3186_v45, %v3185_v0  ;;  %v3187_v11 = vld [vmem:[#allocation17 + $0xb0] sm:$0xff] }
 0x651   :  { %5448 = vmatmul.mubr.msk.f32.gmra.mrb[22].mxu0 %vm286_vm0, %v7278_v20  ;;  %6081 = vmatprep.subr.bf16.mxu1 %v6080_v46  ;;  %v2907_v20 = vld [vmem:[#allocation19 + $0x10] sm:$0xff] }
 0x652   :  { %5450 = vmatprep.mubr.msk.f32.mxu0 %vm286_vm0, %v7285_v23 }
 0x655   :  { %5451 = vmatmul.mubr.msk.f32.gmra.mrb[24].mxu0 %vm286_vm0, %v7302_v30  ;;  %v6084_v30 = vpack.c.bf16 %v2908_v1, %v2907_v20  ;;  %v3273_v1 = vld [vmem:[#allocation19 + $0x80] sm:$0xff] }
 0x656   :  { %5453 = vmatprep.mubr.msk.f32.mxu0 %vm286_vm0, %v7309_v31  ;;  %v2909_v31 = vld [vmem:[#allocation19 + $0x20] sm:$0xff] }
 0x657   :  { %v6088_v48 = vpack.c.bf16 %v2910_v47, %v2909_v31  ;;  %v3275_v47 = vld [vmem:[#allocation19 + $0x90] sm:$0xff] }
 0x659   :  { %5454 = vmatmul.mubr.msk.f32.gmra.mrb[26].mxu0 %vm286_vm0, %v7320_v34 }
 0x65a   :  { %5650 = vmatprep.mubr.msk.f32.mxu0 %vm286_vm0, %v7233_v5 }
 0x710   :  { %v7533_v44 = vpop.f32.mrb[12].mxu0 }
 0x711   :  { %v7535_v23 = vpop.f32.mrb[13].mxu0 }
 0x712   :  { %5510 = vmatprep.mubr.msk.f32.mxu1 %vm530_vm1, %v7535_v23 }
 0x713   :  { %5511 = vmatmul.mubr.msk.f32.vlgmr.msra.gmra.mrb[20].mxu1 %vm530_vm1, %v7533_v44 }
 0x714   :  { %6083 = vmatpush3.bf16.msra.mxu1 %v6080_v46  ;;  %v7541_v5 = vpop.f32.mrb[14].mxu0  ;;  %v3188_v46 = vld [vmem:[#allocation17 + $0xb8] sm:$0xff] }
 0x715   :  { %v7543_v34 = vpop.f32.mrb[15].mxu0  ;;  %6085 = vmatprep.subr.bf16.mxu1 %v6084_v30  ;;  %v6140_v20 = vpack.c.bf16 %v3188_v46, %v3187_v11  ;;  %v3675_v46 = vld [vmem:[#allocation22] sm:$0xff] }
 0x718   :  { %6087 = vmatpush3.bf16.msra.mxu1 %v6084_v30  ;;  %v7545_v53 = vpop.f32.mrb[16].mxu0  ;;  %v3274_v30 = vld [vmem:[#allocation19 + $0x88] sm:$0xff] }
 0x719   :  { %v7547_v54 = vpop.f32.mrb[17].mxu0  ;;  %6089 = vmatprep.subr.bf16.mxu1 %v6088_v48  ;;  %v6144_v31 = vpack.c.bf16 %v3274_v30, %v3273_v1 }
 0x71c   :  { %6091 = vmatpush3.bf16.msra.mxu1 %v6088_v48  ;;  %v7549_v60 = vpop.f32.mrb[18].mxu0  ;;  %v3276_v48 = vld [vmem:[#allocation19 + $0x98] sm:$0xff] }
 0x71d   :  { %v7551_v61 = vpop.f32.mrb[19].mxu0  ;;  %6093 = vmatprep.subr.bf16.mxu1 %v6092_v55  ;;  %v6148_v49 = vpack.c.bf16 %v3276_v48, %v3275_v47  ;;  %v3677_v47 = vld [vmem:[#allocation22 + $0x10] sm:$0xff]  ;;  %v3678_v48 = vld [vmem:[#allocation22 + $0x18] sm:$0xff] }
 0x720   :  { %6095 = vmatpush3.bf16.msra.mxu1 %v6092_v55  ;;  %v5446_v51 = vpop.f32.mrb[20].mxu0  ;;  %v3278_v55 = vld [vmem:[#allocation19 + $0xa8] sm:$0xff] }
 0x721   :  { %v2590_v9 = vpop.f32.mrb[21].mxu0  ;;  %6097 = vmatprep.subr.bf16.mxu1 %v6096_v62  ;;  %v6152_v56 = vpack.c.bf16 %v3278_v55, %v3277_v52  ;;  %v3679_v52 = vld [vmem:[#allocation22 + $0x20] sm:$0xff]  ;;  %v3680_v55 = vld [vmem:[#allocation22 + $0x28] sm:$0xff] }
 0x722   :  { %5529 = vmatprep.mubr.msk.f32.mxu1 %vm530_vm1, %v2590_v9 }
 0x723   :  { %5530 = vmatmul.mubr.msk.f32.vlgmr.msra.gmra.mrb[20].mxu1 %vm530_vm1, %v5446_v51  ;;  %v3366_v51 = vld [vmem:[#allocation17 + $0xc8] sm:$0xff] }
 0x724   :  { %6099 = vmatpush3.bf16.msra.mxu1 %v6096_v62  ;;  %5548 = vmatprep.mubr.msk.f32.mxu1 %vm530_vm1, %v7543_v34  ;;  %v5449_v17 = vpop.f32.mrb[22].mxu0  ;;  %v3280_v62 = vld [vmem:[#allocation19 + $0xb8] sm:$0xff]  ;;  %v6160_v9 = vpack.c.bf16 %v3366_v51, %v3365_v6  ;;  %v6482_v6 = vld [vmem:[%s7734_s15 + $0x20] sm:$0xff] }
 0x725   :  { %6101 = vmatprep.subr.bf16.mxu1 %v6100_v12  ;;  %v2600_v50 = vpop.f32.mrb[23].mxu0  ;;  %v6156_v63 = vpack.c.bf16 %v3280_v62, %v3279_v58  ;;  %v3681_v58 = vld [vmem:[#allocation22 + $0x30] sm:$0xff]  ;;  %v3682_v62 = vld [vmem:[#allocation22 + $0x38] sm:$0xff] }
 0x726   :  { %v6208_v51 = vpack.c.bf16 %v3682_v62, %v3681_v58 }
 0x728   :  { %6103 = vmatpush3.bf16.msra.mxu1 %v6100_v12  ;;  %v7557_v22 = vpop.f32.mrb[24].mxu0  ;;  %v3367_v12 = vld [vmem:[#allocation17 + $0xd0] sm:$0xff] }
 0x729   :  { %6105 = vmatprep.subr.bf16.mxu1 %v6104_v18  ;;  %v2610_v24 = vpop.f32.mrb[25].mxu0  ;;  %v6164_v16 = vpack.c.bf16 %v3368_v15, %v3367_v12  ;;  %v3668_v12 = vld [vmem:[#allocation20 + $0x8] sm:$0xff]  ;;  %v6483_v15 = vld [vmem:[%s7734_s15 + $0x28] sm:$0xff] }
 0x72c   :  { %6107 = vmatpush3.bf16.msra.mxu1 %v6104_v18  ;;  %v7559_v26 = vpop.f32.mrb[26].mxu0  ;;  %v3370_v18 = vld [vmem:[#allocation17 + $0xe8] sm:$0xff] }
 0x72d   :  { %6109 = vmatprep.subr.bf16.mxu1 %v6108_v4  ;;  %v7561_v27 = vpop.f32.mrb[27].mxu0 }
 0x730   :  { %6111 = vmatpush3.bf16.msra.mxu1 %v6108_v4  ;;  %v6172_v4 = vpack.c.bf16 %v3372_v21, %v3371_v19  ;;  %v6485_v19 = vld [vmem:[%s7734_s15 + $0x38] sm:$0xff] }
 0x731   :  { %6113 = vmatprep.subr.bf16.mxu1 %v6112_v59 }
 0x733   :  { %5549 = vmatmul.mubr.msk.f32.vlgmr.msra.gmra.mrb[20].mxu1 %vm530_vm1, %v7541_v5 }
 0x734   :  { %6115 = vmatpush3.bf16.msra.mxu1 %v6112_v59  ;;  %5567 = vmatprep.mubr.msk.f32.mxu1 %vm530_vm1, %v2600_v50  ;;  %v3459_v59 = vld [vmem:[#allocation19 + $0xd0] sm:$0xff] }
 0x735   :  { %6117 = vmatprep.subr.bf16.mxu1 %v6116_v32 }
 0x738   :  { %6119 = vmatpush3.bf16.msra.mxu1 %v6116_v32  ;;  %v3462_v32 = vld [vmem:[#allocation19 + $0xe8] sm:$0xff] }
 0x739   :  { %6121 = vmatprep.subr.bf16.mxu1 %v6120_v33  ;;  %v6184_v14 = vpack.c.bf16 %v3462_v32, %v3461_v29  ;;  %v3849_v29 = vld [vmem:[#allocation23 + $0x8] sm:$0xff] }
 0x73c   :  { %6123 = vmatpush3.bf16.msra.mxu1 %v6120_v33  ;;  %v3464_v33 = vld [vmem:[#allocation19 + $0xf8] sm:$0xff] }
 0x73d   :  { %6125 = vmatprep.subr.bf16.mxu1 %v6124_v37  ;;  %v6188_v36 = vpack.c.bf16 %v3464_v33, %v3463_v57  ;;  %v3851_v57 = vld [vmem:[#allocation23 + $0x18] sm:$0xff] }
 0x740   :  { %6127 = vmatpush3.bf16.msra.mxu1 %v6124_v37 }
 0x741   :  { %6129 = vmatprep.subr.bf16.mxu1 %v6128_v8 }
 0x743   :  { %5568 = vmatmul.mubr.msk.f32.vlgmr.msra.gmra.mrb[20].mxu1 %vm530_vm1, %v5449_v17  ;;  %v3369_v17 = vld [vmem:[#allocation17 + $0xe0] sm:$0xff] }
 0x744   :  { %6131 = vmatpush3.bf16.msra.mxu1 %v6128_v8  ;;  %5586 = vmatprep.mubr.msk.f32.mxu1 %vm530_vm1, %v7547_v54  ;;  %v6168_v50 = vpack.c.bf16 %v3370_v18, %v3369_v17  ;;  %v3669_v18 = vld [vmem:[#allocation20 + $0x10] sm:$0xff] }
 0x745   :  { %6133 = vmatprep.subr.bf16.mxu1 %v6132_v42 }
 0x748   :  { %6135 = vmatpush3.bf16.msra.mxu1 %v6132_v42 }
 0x749   :  { %6137 = vmatprep.subr.bf16.mxu1 %v6136_v7 }
 0x74c   :  { %6139 = vmatpush3.bf16.msra.mxu1 %v6136_v7 }
 0x74d   :  { %6141 = vmatprep.subr.bf16.mxu1 %v6140_v20 }
 0x750   :  { %6143 = vmatpush3.bf16.msra.mxu1 %v6140_v20  ;;  %v3676_v20 = vld [vmem:[#allocation22 + $0x8] sm:$0xff] }
 0x751   :  { %6145 = vmatprep.subr.bf16.mxu1 %v6144_v31 }
 0x753   :  { %5587 = vmatmul.mubr.msk.f32.vlgmr.msra.gmra.mrb[20].mxu1 %vm530_vm1, %v7545_v53 }
 0x754   :  { %6147 = vmatpush3.bf16.msra.mxu1 %v6144_v31  ;;  %5605 = vmatprep.mubr.msk.f32.mxu1 %vm530_vm1, %v2610_v24  ;;  %v3457_v24 = vld [vmem:[#allocation19 + $0xc0] sm:$0xff]  ;;  %v6196_v31 = vpack.c.bf16 %v3676_v20, %v3675_v46  ;;  %v3938_v46 = vld [vmem:[#allocation25 + $0x28] sm:$0xff]  ;;  %v3939_v20 = vld [vmem:[#allocation25 + $0x30] sm:$0xff] }
 0x755   :  { %6149 = vmatprep.subr.bf16.mxu1 %v6148_v49  ;;  %v6176_v2 = vpack.c.bf16 %v3458_v25, %v3457_v24  ;;  %v3672_v24 = vld [vmem:[#allocation20 + $0x28] sm:$0xff] }
 0x758   :  { %6151 = vmatpush3.bf16.msra.mxu1 %v6148_v49  ;;  %v6200_v49 = vpack.c.bf16 %v3678_v48, %v3677_v47  ;;  %v4026_v47 = vld [vmem:[#allocation23 + $0x48] sm:$0xff] }
 0x759   :  { %6153 = vmatprep.subr.bf16.mxu1 %v6152_v56 }
 0x75c   :  { %6155 = vmatpush3.bf16.msra.mxu1 %v6152_v56  ;;  %v6479_v56 = vld [vmem:[%s7734_s15 + $0x8] sm:$0xff] }
 0x75d   :  { %6157 = vmatprep.subr.bf16.mxu1 %v6156_v63 }
 0x760   :  { %6159 = vmatpush3.bf16.msra.mxu1 %v6156_v63  ;;  %v6481_v63 = vld [vmem:[%s7734_s15 + $0x18] sm:$0xff] }
 0x761   :  { %6161 = vmatprep.subr.bf16.mxu1 %v6160_v9 }
 0x763   :  { %5606 = vmatmul.mubr.msk.f32.vlgmr.msra.gmra.mrb[20].mxu1 %vm530_vm1, %v7557_v22  ;;  %v6180_v22 = vpack.c.bf16 %v3460_v28, %v3459_v59  ;;  %v3674_v59 = vld [vmem:[#allocation20 + $0x38] sm:$0xff] }
 0x764   :  { %6163 = vmatpush3.bf16.msra.mxu1 %v6160_v9  ;;  %5624 = vmatprep.mubr.msk.f32.mxu1 %vm530_vm1, %v7551_v61  ;;  %v3667_v9 = vld [vmem:[#allocation20] sm:$0xff] }
 0x765   :  { %6165 = vmatprep.subr.bf16.mxu1 %v6164_v16  ;;  %v6212_v17 = vpack.c.bf16 %v3668_v12, %v3667_v9 }
 0x768   :  { %6167 = vmatpush3.bf16.msra.mxu1 %v6164_v16  ;;  %v6484_v16 = vld [vmem:[%s7734_s15 + $0x30] sm:$0xff] }
 0x769   :  { %6169 = vmatprep.subr.bf16.mxu1 %v6168_v50 }
 0x76c   :  { %6171 = vmatpush3.bf16.msra.mxu1 %v6168_v50  ;;  %v3670_v50 = vld [vmem:[#allocation20 + $0x18] sm:$0xff] }
 0x76d   :  { %6173 = vmatprep.subr.bf16.mxu1 %v6172_v4  ;;  %v6216_v21 = vpack.c.bf16 %v3670_v50, %v3669_v18 }
 0x770   :  { %6175 = vmatpush3.bf16.msra.mxu1 %v6172_v4  ;;  %v3671_v4 = vld [vmem:[#allocation20 + $0x20] sm:$0xff] }
 0x771   :  { %6177 = vmatprep.subr.bf16.mxu1 %v6176_v2  ;;  %v6220_v25 = vpack.c.bf16 %v3672_v24, %v3671_v4  ;;  %v4115_v24 = vld [vmem:[#allocation25 + $0x60] sm:$0xff] }
 0x773   :  { %5625 = vmatmul.mubr.msk.f32.vlgmr.msra.gmra.mrb[20].mxu1 %vm530_vm1, %v7549_v60 }
 0x774   :  { %6179 = vmatpush3.bf16.msra.mxu1 %v6176_v2  ;;  %5643 = vmatprep.mubr.msk.f32.mxu1 %vm530_vm1, %v7561_v27  ;;  %v3673_v2 = vld [vmem:[#allocation20 + $0x30] sm:$0xff] }
 0x775   :  { %6181 = vmatprep.subr.bf16.mxu1 %v6180_v22  ;;  %v6224_v28 = vpack.c.bf16 %v3674_v59, %v3673_v2  ;;  %v4117_v59 = vld [vmem:[#allocation25 + $0x70] sm:$0xff] }
 0x778   :  { %6183 = vmatpush3.bf16.msra.mxu1 %v6180_v22  ;;  %v3848_v22 = vld [vmem:[#allocation23] sm:$0xff] }
 0x779   :  { %6185 = vmatprep.subr.bf16.mxu1 %v6184_v14  ;;  %v6228_v32 = vpack.c.bf16 %v3849_v29, %v3848_v22  ;;  %v4203_v29 = vld [vmem:[#allocation23 + $0x80] sm:$0xff] }
 0x77c   :  { %6187 = vmatpush3.bf16.msra.mxu1 %v6184_v14  ;;  %v3850_v14 = vld [vmem:[#allocation23 + $0x10] sm:$0xff] }
 0x77d   :  { %6189 = vmatprep.subr.bf16.mxu1 %v6188_v36  ;;  %v6232_v33 = vpack.c.bf16 %v3851_v57, %v3850_v14  ;;  %v4205_v57 = vld [vmem:[#allocation23 + $0x90] sm:$0xff] }
 0x780   :  { %6191 = vmatpush3.bf16.msra.mxu1 %v6188_v36  ;;  %v3852_v36 = vld [vmem:[#allocation23 + $0x20] sm:$0xff] }
 0x783   :  { %5644 = vmatmul.mubr.msk.f32.vlgmr.msra.gmra.mrb[20].mxu1 %vm530_vm1, %v7559_v26 }
 0x856   :  { %v5645_v37 = vpop.f32.mrb[20].mxu1 }
 0x857   :  { %v6364_v39 = vadd.f32 %v5645_v37, %v4698_v13  ;;  %v3537_v27 = vpop.f32.mrb[21].mxu1 }
 0x858   :  { %v6365_v40 = vadd.f32 %v4698_v13, %v3537_v27  ;;  %v3853_v13 = vld [vmem:[#allocation23 + $0x28] sm:$0xff]  ;;  %v3855_v27 = vld [vmem:[#allocation23 + $0x38] sm:$0xff] }
 0x859   :  { %v4716_v8 = vmul.f32 -1.442695, %v6364_v39  ;;  %v6236_v37 = vpack.c.bf16 %v3853_v13, %v3852_v36  ;;  %v3854_v39 = vld [vmem:[#allocation23 + $0x30] sm:$0xff]  ;;  %v4207_v36 = vld [vmem:[#allocation23 + $0xa0] sm:$0xff]  ;;  %v4208_v13 = vld [vmem:[#allocation23 + $0xa8] sm:$0xff] }
 0x85a   :  { %v4715_v3 = vmul.f32 -1.442695, %v6365_v40  ;;  %v6240_v40 = vpack.c.bf16 %v3855_v27, %v3854_v39  ;;  %v4209_v39 = vld [vmem:[#allocation23 + $0xb0] sm:$0xff]  ;;  %v4210_v27 = vld [vmem:[#allocation23 + $0xb8] sm:$0xff] }
 0x85b   :  { %6467 = vpow2.f32 %v4716_v8  ;;  %v3933_v8 = vld [vmem:[#allocation25] sm:$0xff] }
 0x85c   :  { %6469 = vpow2.f32 %v4715_v3  ;;  %v3934_v3 = vld [vmem:[#allocation25 + $0x8] sm:$0xff] }
 0x865   :  { %v6468_v41 = vpop.eup %6467 }
 0x866   :  { %v6470_v42 = vpop.eup %6469  ;;  %v3555_v0 = vadd.f32 1.0, %v6468_v41  ;;  %v6244_v41 = vpack.c.bf16 %v3934_v3, %v3933_v8  ;;  %v4289_v8 = vld [vmem:[#allocation25 + $0x80] sm:$0xff]  ;;  %v4290_v3 = vld [vmem:[#allocation25 + $0x88] sm:$0xff] }
 0x867   :  { %v3554_v45 = vadd.f32 1.0, %v6470_v42  ;;  %v3935_v42 = vld [vmem:[#allocation25 + $0x10] sm:$0xff] }
 0x868   :  { %6471 = vrcp.f32 %v3555_v0  ;;  %v3936_v0 = vld [vmem:[#allocation25 + $0x18] sm:$0xff] }
 0x869   :  { %6473 = vrcp.f32 %v3554_v45  ;;  %v6248_v45 = vpack.c.bf16 %v3936_v0, %v3935_v42  ;;  %v4291_v42 = vld [vmem:[#allocation25 + $0x90] sm:$0xff]  ;;  %v4292_v0 = vld [vmem:[#allocation25 + $0x98] sm:$0xff] }
 0x872   :  { %v7585_v7 = vpop.eup %6471 }
 0x873   :  { %v7587_v26 = vpop.eup %6473  ;;  %v3561_v11 = vmul.f32 %v7585_v7, %v7475_v10  ;;  %v6204_v10 = vpack.c.bf16 %v3680_v55, %v3679_v52  ;;  %v4028_v52 = vld [vmem:[#allocation23 + $0x58] sm:$0xff] }
 0x874   :  { %v3560_v1 = vmul.f32 %v7587_v26, %v7469_v43  ;;  %v6480_v43 = vld [vmem:[%s7734_s15 + $0x10] sm:$0xff] }
 0x876   :  { %v6192_v30 = vpack.c.bf16 %v3561_v11, %v3560_v1 }
 0x878   :  { %6193 = vmatprep.subr.bf16.mxu0 %v6192_v30 }
 0x879   :  { %6195 = vmatpush3.bf16.msra.mxu0 %v6192_v30 }
 0x87a   :  { %6197 = vmatprep.subr.bf16.mxu0 %v6196_v31 }
 0x87c   :  { %5651 = vmatmul.mubr.msk.f32.vlgmr.msra.gmra.mrb[28].mxu0 %vm286_vm0, %v6479_v56 }
 0x87d   :  { %6199 = vmatpush3.bf16.msra.mxu0 %v6196_v31  ;;  %5653 = vmatprep.mubr.msk.f32.mxu0 %vm286_vm0, %v6480_v43  ;;  %v4025_v31 = vld [vmem:[#allocation23 + $0x40] sm:$0xff] }
 0x87e   :  { %6201 = vmatprep.subr.bf16.mxu0 %v6200_v49  ;;  %v6260_v48 = vpack.c.bf16 %v4026_v47, %v4025_v31  ;;  %v4029_v43 = vld [vmem:[#allocation23 + $0x60] sm:$0xff]  ;;  %v4382_v31 = vld [vmem:[#allocation23 + $0xc8] sm:$0xff] }
 0x880   :  { %5654 = vmatmul.mubr.msk.f32.gmra.mrb[30].mxu0 %vm286_vm0, %v6481_v63 }
 0x881   :  { %6203 = vmatpush3.bf16.msra.mxu0 %v6200_v49  ;;  %5656 = vmatprep.mubr.msk.f32.mxu0 %vm286_vm0, %v6482_v6  ;;  %v4027_v49 = vld [vmem:[#allocation23 + $0x50] sm:$0xff] }
 0x882   :  { %6205 = vmatprep.subr.bf16.mxu0 %v6204_v10  ;;  %v4031_v6 = vld [vmem:[#allocation23 + $0x70] sm:$0xff] }
 0x884   :  { %5657 = vmatmul.mubr.msk.f32.gmra.mrb[32].mxu0 %vm286_vm0, %v6483_v15 }
 0x885   :  { %6207 = vmatpush3.bf16.msra.mxu0 %v6204_v10  ;;  %5659 = vmatprep.mubr.msk.f32.mxu0 %vm286_vm0, %v6484_v16  ;;  %v4030_v10 = vld [vmem:[#allocation23 + $0x68] sm:$0xff]  ;;  %v4111_v16 = vld [vmem:[#allocation25 + $0x40] sm:$0xff] }
 0x886   :  { %6209 = vmatprep.subr.bf16.mxu0 %v6208_v51  ;;  %v6268_v62 = vpack.c.bf16 %v4030_v10, %v4029_v43  ;;  %v4388_v43 = vld [vmem:[#allocation23 + $0xf8] sm:$0xff] }
 0x888   :  { %5660 = vmatmul.mubr.msk.f32.gmra.mrb[34].mxu0 %vm286_vm0, %v6485_v19  ;;  %v4113_v19 = vld [vmem:[#allocation25 + $0x50] sm:$0xff] }
 0x889   :  { %6211 = vmatpush3.bf16.msra.mxu0 %v6208_v51  ;;  %5678 = vmatprep.mubr.msk.f32.mxu0 %vm530_vm1, %v3560_v1  ;;  %v3940_v1 = vld [vmem:[#allocation25 + $0x38] sm:$0xff] }
 0x88a   :  { %6213 = vmatprep.subr.bf16.mxu0 %v6212_v17  ;;  %v6256_v30 = vpack.c.bf16 %v3940_v1, %v3939_v20  ;;  %v4032_v51 = vld [vmem:[#allocation23 + $0x78] sm:$0xff] }
 0x88b   :  { %v6272_v12 = vpack.c.bf16 %v4032_v51, %v4031_v6  ;;  %v4296_v20 = vld [vmem:[#allocation25 + $0xb8] sm:$0xff]  ;;  %v4469_v6 = vld [vmem:[#allocation25 + $0xd0] sm:$0xff] }
 0x88c   :  { %5679 = vmatmul.mubr.msk.f32.vlgmr.msra.gmra.mrb[36].mxu0 %vm530_vm1, %v3561_v11  ;;  %v3937_v11 = vld [vmem:[#allocation25 + $0x20] sm:$0xff]  ;;  %v4470_v51 = vld [vmem:[#allocation25 + $0xd8] sm:$0xff] }
 0x88d   :  { %6215 = vmatpush3.bf16.msra.mxu0 %v6212_v17  ;;  %5697 = vmatprep.mubr.msk.f32.mxu0 %vm530_vm1, %v7489_v35  ;;  %v4112_v17 = vld [vmem:[#allocation25 + $0x48] sm:$0xff] }
 0x88e   :  { %6217 = vmatprep.subr.bf16.mxu0 %v6216_v21  ;;  %v6276_v50 = vpack.c.bf16 %v4112_v17, %v4111_v16  ;;  %v4473_v16 = vld [vmem:[#allocation25 + $0xf0] sm:$0xff]  ;;  %v4474_v17 = vld [vmem:[#allocation25 + $0xf8] sm:$0xff] }
 0x891   :  { %6219 = vmatpush3.bf16.msra.mxu0 %v6216_v21  ;;  %v4114_v21 = vld [vmem:[#allocation25 + $0x58] sm:$0xff] }
 0x892   :  { %6221 = vmatprep.subr.bf16.mxu0 %v6220_v25  ;;  %v6280_v4 = vpack.c.bf16 %v4114_v21, %v4113_v19 }
 0x895   :  { %6223 = vmatpush3.bf16.msra.mxu0 %v6220_v25  ;;  %v4116_v25 = vld [vmem:[#allocation25 + $0x68] sm:$0xff] }
 0x896   :  { %6225 = vmatprep.subr.bf16.mxu0 %v6224_v28  ;;  %v6284_v2 = vpack.c.bf16 %v4116_v25, %v4115_v24 }
 0x899   :  { %6227 = vmatpush3.bf16.msra.mxu0 %v6224_v28  ;;  %v4118_v28 = vld [vmem:[#allocation25 + $0x78] sm:$0xff] }
 0x89a   :  { %6229 = vmatprep.subr.bf16.mxu0 %v6228_v32  ;;  %v6288_v22 = vpack.c.bf16 %v4118_v28, %v4117_v59  ;;  %v4561_v59 = vpop.permute.xlu0 %4560 }
 0x89c   :  { %5698 = vmatmul.mubr.msk.f32.vlgmr.msra.gmra.mrb[36].mxu0 %vm530_vm1, %v7493_v38 }
 0x89d   :  { %6231 = vmatpush3.bf16.msra.mxu0 %v6228_v32  ;;  %5716 = vmatprep.mubr.msk.f32.mxu0 %vm530_vm1, %v7535_v23  ;;  %v6252_v23 = vpack.c.bf16 %v3938_v46, %v3937_v11  ;;  %v4204_v32 = vld [vmem:[#allocation23 + $0x88] sm:$0xff]  ;;  %v4293_v11 = vld [vmem:[#allocation25 + $0xa0] sm:$0xff] }
 0x89e   :  { %6233 = vmatprep.subr.bf16.mxu0 %v6232_v33  ;;  %v6292_v14 = vpack.c.bf16 %v4204_v32, %v4203_v29  ;;  %v4294_v46 = vld [vmem:[#allocation25 + $0xa8] sm:$0xff] }
 0x8a1   :  { %6235 = vmatpush3.bf16.msra.mxu0 %v6232_v33  ;;  %v4206_v33 = vld [vmem:[#allocation23 + $0x98] sm:$0xff] }
 0x8a2   :  { %6237 = vmatprep.subr.bf16.mxu0 %v6236_v37 }
 0x8a5   :  { %6239 = vmatpush3.bf16.msra.mxu0 %v6236_v37  ;;  %v6300_v37 = vpack.c.bf16 %v4208_v13, %v4207_v36 }
 0x8a6   :  { %6241 = vmatprep.subr.bf16.mxu0 %v6240_v40 }
 0x8a9   :  { %6243 = vmatpush3.bf16.msra.mxu0 %v6240_v40  ;;  %v6304_v40 = vpack.c.bf16 %v4210_v27, %v4209_v39 }
 0x8aa   :  { %6245 = vmatprep.subr.bf16.mxu0 %v6244_v41 }
 0x8ac   :  { %5717 = vmatmul.mubr.msk.f32.vlgmr.msra.gmra.mrb[36].mxu0 %vm530_vm1, %v7533_v44  ;;  %v6264_v44 = vpack.c.bf16 %v4028_v52, %v4027_v49  ;;  %v4384_v49 = vld [vmem:[#allocation23 + $0xd8] sm:$0xff]  ;;  %v4385_v52 = vld [vmem:[#allocation23 + $0xe0] sm:$0xff] }
 0x8ad   :  { %6247 = vmatpush3.bf16.msra.mxu0 %v6244_v41  ;;  %v6308_v41 = vpack.c.bf16 %v4290_v3, %v4289_v8 }
 0x8ae   :  { %6249 = vmatprep.subr.bf16.mxu0 %v6248_v45 }
 0x8b1   :  { %6251 = vmatpush3.bf16.msra.mxu0 %v6248_v45  ;;  %v6312_v45 = vpack.c.bf16 %v4292_v0, %v4291_v42 }
 0x8b2   :  { %6253 = vmatprep.subr.bf16.mxu0 %v6252_v23 }
 0x8b5   :  { %6255 = vmatpush3.bf16.msra.mxu0 %v6252_v23  ;;  %v4295_v23 = vld [vmem:[#allocation25 + $0xb0] sm:$0xff] }
 0x8b6   :  { %6257 = vmatprep.subr.bf16.mxu0 %v6256_v30  ;;  %v6320_v1 = vpack.c.bf16 %v4296_v20, %v4295_v23 }
 0x8b9   :  { %6259 = vmatpush3.bf16.msra.mxu0 %v6256_v30  ;;  %v4381_v30 = vld [vmem:[#allocation23 + $0xc0] sm:$0xff] }
 0x8ba   :  { %6261 = vmatprep.subr.bf16.mxu0 %v6260_v48  ;;  %v6324_v47 = vpack.c.bf16 %v4382_v31, %v4381_v30 }
 0x94f   :  { %v5652_v55 = vpop.f32.mrb[28].mxu0 }
 0x950   :  { %v3628_v56 = vpop.f32.mrb[29].mxu0 }
 0x951   :  { %5735 = vmatprep.mubr.msk.f32.mxu0 %vm530_vm1, %v3628_v56 }
 0x952   :  { %5736 = vmatmul.mubr.msk.f32.vlgmr.msra.gmra.mrb[36].mxu0 %vm530_vm1, %v5652_v55  ;;  %v4386_v55 = vld [vmem:[#allocation23 + $0xe8] sm:$0xff] }
 0x953   :  { %6263 = vmatpush3.bf16.msra.mxu0 %v6260_v48  ;;  %5754 = vmatprep.mubr.msk.f32.mxu0 %vm530_vm1, %v7543_v34  ;;  %v5655_v58 = vpop.f32.mrb[30].mxu0  ;;  %v4383_v48 = vld [vmem:[#allocation23 + $0xd0] sm:$0xff]  ;;  %v6332_v56 = vpack.c.bf16 %v4386_v55, %v4385_v52 }
 0x954   :  { %6265 = vmatprep.subr.bf16.mxu0 %v6264_v44  ;;  %v3638_v63 = vpop.f32.mrb[31].mxu0 }
 0x957   :  { %6267 = vmatpush3.bf16.msra.mxu0 %v6264_v44  ;;  %v7635_v9 = vpop.f32.mrb[32].mxu0  ;;  %v4387_v44 = vld [vmem:[#allocation23 + $0xf0] sm:$0xff] }
 0x958   :  { %6269 = vmatprep.subr.bf16.mxu0 %v6268_v62  ;;  %v3648_v15 = vpop.f32.mrb[33].mxu0  ;;  %v6336_v10 = vpack.c.bf16 %v4388_v43, %v4387_v44 }
 0x95b   :  { %6271 = vmatpush3.bf16.msra.mxu0 %v6268_v62  ;;  %v7637_v18 = vpop.f32.mrb[34].mxu0  ;;  %v4468_v62 = vld [vmem:[#allocation25 + $0xc8] sm:$0xff] }
 0x95c   :  { %6273 = vmatprep.subr.bf16.mxu0 %v6272_v12  ;;  %v7639_v34 = vpop.f32.mrb[35].mxu0 }
 0x95f   :  { %6275 = vmatpush3.bf16.msra.mxu0 %v6272_v12  ;;  %v4471_v12 = vld [vmem:[#allocation25 + $0xe0] sm:$0xff] }
 0x960   :  { %6277 = vmatprep.subr.bf16.mxu0 %v6276_v50 }
 0x962   :  { %5755 = vmatmul.mubr.msk.f32.vlgmr.msra.gmra.mrb[36].mxu0 %vm530_vm1, %v7541_v5  ;;  %v6296_v5 = vpack.c.bf16 %v4206_v33, %v4205_v57  ;;  %v4566_v57 = vmul.f32 %v7587_v26, %v4561_v59 }
 0x963   :  { %6279 = vmatpush3.bf16.msra.mxu0 %v6276_v50  ;;  %5773 = vmatprep.mubr.msk.f32.mxu0 %vm530_vm1, %v3638_v63  ;;  %v6352_v50 = vpack.c.bf16 %v4474_v17, %v4473_v16 }
 0x964   :  { %6281 = vmatprep.subr.bf16.mxu0 %v6280_v4 }
 0x967   :  { %6283 = vmatpush3.bf16.msra.mxu0 %v6280_v4 }
 0x968   :  { %6285 = vmatprep.subr.bf16.mxu0 %v6284_v2 }
 0x96b   :  { %6287 = vmatpush3.bf16.msra.mxu0 %v6284_v2  ;;  %v4563_v2 = vpop.permute.xlu1 %4562 }
 0x96c   :  { %6289 = vmatprep.subr.bf16.mxu0 %v6288_v22  ;;  %v4567_v29 = vmul.f32 %v7585_v7, %v4563_v2 }
 0x96f   :  { %6291 = vmatpush3.bf16.msra.mxu0 %v6288_v22  ;;  %v4568_v22 = vsub.f32 1.0, %v7587_v26 }
 0x970   :  { %6293 = vmatprep.subr.bf16.mxu0 %v6292_v14 }
 0x972   :  { %5774 = vmatmul.mubr.msk.f32.vlgmr.msra.gmra.mrb[36].mxu0 %vm530_vm1, %v5655_v58  ;;  %v4467_v58 = vld [vmem:[#allocation25 + $0xc0] sm:$0xff] }
 0x973   :  { %6295 = vmatpush3.bf16.msra.mxu0 %v6292_v14  ;;  %5792 = vmatprep.mubr.msk.f32.mxu0 %vm530_vm1, %v7547_v54  ;;  %v6316_v54 = vpack.c.bf16 %v4294_v46, %v4293_v11  ;;  %v6340_v63 = vpack.c.bf16 %v4468_v62, %v4467_v58 }
 0x974   :  { %6297 = vmatprep.subr.bf16.mxu0 %v6296_v5 }
 0x977   :  { %6299 = vmatpush3.bf16.msra.mxu0 %v6296_v5 }
 0x978   :  { %6301 = vmatprep.subr.bf16.mxu0 %v6300_v37 }
 0x97b   :  { %6303 = vmatpush3.bf16.msra.mxu0 %v6300_v37 }
 0x97c   :  { %6305 = vmatprep.subr.bf16.mxu0 %v6304_v40 }
 0x97f   :  { %6307 = vmatpush3.bf16.msra.mxu0 %v6304_v40 }
 0x980   :  { %6309 = vmatprep.subr.bf16.mxu0 %v6308_v41 }
 0x982   :  { %5793 = vmatmul.mubr.msk.f32.vlgmr.msra.gmra.mrb[36].mxu0 %vm530_vm1, %v7545_v53  ;;  %v6328_v53 = vpack.c.bf16 %v4384_v49, %v4383_v48 }
 0x983   :  { %6311 = vmatpush3.bf16.msra.mxu0 %v6308_v41  ;;  %5811 = vmatprep.mubr.msk.f32.mxu0 %vm530_vm1, %v3648_v15  ;;  %v4472_v15 = vld [vmem:[#allocation25 + $0xe8] sm:$0xff] }
 0x984   :  { %6313 = vmatprep.subr.bf16.mxu0 %v6312_v45 }
 0x987   :  { %6315 = vmatpush3.bf16.msra.mxu0 %v6312_v45 }
 0x988   :  { %6317 = vmatprep.subr.bf16.mxu0 %v6316_v54 }
 0x98b   :  { %6319 = vmatpush3.bf16.msra.mxu0 %v6316_v54 }
 0x98c   :  { %6321 = vmatprep.subr.bf16.mxu0 %v6320_v1 }
 0x98f   :  { %6323 = vmatpush3.bf16.msra.mxu0 %v6320_v1 }
 0x990   :  { %6325 = vmatprep.subr.bf16.mxu0 %v6324_v47 }
 0x992   :  { %5812 = vmatmul.mubr.msk.f32.vlgmr.msra.gmra.mrb[36].mxu0 %vm530_vm1, %v7635_v9  ;;  %v6344_v9 = vpack.c.bf16 %v4470_v51, %v4469_v6 }
 0x993   :  { %6327 = vmatpush3.bf16.msra.mxu0 %v6324_v47  ;;  %5830 = vmatprep.mubr.msk.f32.mxu0 %vm530_vm1, %v7551_v61  ;;  %v6348_v61 = vpack.c.bf16 %v4472_v15, %v4471_v12 }
 0x994   :  { %6329 = vmatprep.subr.bf16.mxu0 %v6328_v53 }
 0x997   :  { %6331 = vmatpush3.bf16.msra.mxu0 %v6328_v53 }
 0x998   :  { %6333 = vmatprep.subr.bf16.mxu0 %v6332_v56 }
 0x99b   :  { %6335 = vmatpush3.bf16.msra.mxu0 %v6332_v56 }
 0x99c   :  { %6337 = vmatprep.subr.bf16.mxu0 %v6336_v10 }
 0x99f   :  { %6339 = vmatpush3.bf16.msra.mxu0 %v6336_v10 }
 0x9a0   :  { %6341 = vmatprep.subr.bf16.mxu0 %v6340_v63 }
 0x9a2   :  { %5831 = vmatmul.mubr.msk.f32.vlgmr.msra.gmra.mrb[36].mxu0 %vm530_vm1, %v7549_v60  ;;  %v4729_v60 = vld [vmem:[%s7710_s22] ss:$0 sm:$0xff]  ;;  %s6874_s22 = smov [#allocation26]  }
 0x9a3   :  { %6343 = vmatpush3.bf16.msra.mxu0 %v6340_v63  ;;  %5849 = vmatprep.mubr.msk.f32.mxu0 %vm530_vm1, %v7639_v34  ;;  %s4591_s3 = sshll.u32 %s6874_s22, 4  ;;  %s4592_s3 = int_to_ptr.vmem [resolvable:$true] %s4591_s3 }
 0x9a4   :  { %6345 = vmatprep.subr.bf16.mxu0 %v6344_v9  ;;  %p6821_p9 = scmp.lt.s32.totalorder %s4592_s3, %s4592_s3 }
 0x9a7   :  { %6347 = vmatpush3.bf16.msra.mxu0 %v6344_v9 }
 0x9a8   :  { %6349 = vmatprep.subr.bf16.mxu0 %v6348_v61 }
 0x9ab   :  { %6351 = vmatpush3.bf16.msra.mxu0 %v6348_v61 }
 0x9ac   :  { %6353 = vmatprep.subr.bf16.mxu0 %v6352_v50 }
 0x9af   :  { %6355 = vmatpush3.bf16.msra.mxu0 %v6352_v50 }
 0x9b2   :  { %5850 = vmatmul.mubr.msk.f32.vlgmr.msra.gmra.mrb[36].mxu0 %vm530_vm1, %v7637_v18  ;;  %v4569_v18 = vsub.f32 1.0, %v7585_v7 }
 0xa85   :  { %v5851_v19 = vpop.f32.mrb[36].mxu0 }
 0xa86   :  { %v6366_v21 = vadd.f32 %v5851_v19, %v4729_v60  ;;  %v4547_v34 = vpop.f32.mrb[37].mxu0 }
 0xa87   :  { %v6367_v4 = vadd.f32 %v4729_v60, %v4547_v34 }
 0xa88   :  { %6475 = vtanh.f32 %v6366_v21 }
 0xa89   :  { %6477 = vtanh.f32 %v6367_v4 }
 0xa92   :  { %v6476_v24 = vpop.eup %6475 }
 0xa93   :  { %v6478_v25 = vpop.eup %6477  ;;  %4574 = vrot.lane.b32.xlu1 %v6476_v24, %s6873_s2 }
 0xa94   :  { %4572 = vrot.lane.b32.xlu0 %v6478_v25, %s6873_s2  ;;  %s6816_s2 = scalar_lea.vmem %s4592_s3, 256 }
 0xa95   :  { %p6817_p8 = scmp.ne.s32.totalorder %s4592_s3, %s6816_s2  ;;  %p6822_p10 = scmp.lt.s32.totalorder %s6816_s2, %s6816_s2 }
 0xa97   :  { %p6823_p11 = por %p6822_p10, %p6821_p9 }
 0xa99   :  { %p6824_p12 = pnand %p6823_p11, %p6817_p8 }
 0xb05   :  { %v4575_v28 = vpop.permute.xlu1 %4574 }
 0xb06   :  { %v4579_v32 = vmul.f32 %v4575_v28, %v4569_v18  ;;  %v4573_v14 = vpop.permute.xlu0 %4572 }
 0xb07   :  { %v4578_v33 = vmul.f32 %v4573_v14, %v4568_v22 }
 0xb08   :  { %v4581_v5 = vadd.f32 %v4579_v32, %v4567_v29 }
 0xb09   :  { %v4580_v36 = vadd.f32 %v4578_v33, %v4566_v57 }
 0xb0a   :  { %v4583_v13 = vsel %vm530_vm1, %v7493_v38, %v4581_v5 }
 0xb0b   :  { %v4582_v37 = vsel %vm530_vm1, %v7489_v35, %v4580_v36  ;;  %4585 = vst [vmem:[#allocation26 + $0x8] sm:$0xff] %v4583_v13 }
 0xb0c   :  { %4584 = vst [vmem:[#allocation26] sm:$0xff] %v4582_v37 }
 0xb0d   :  { %6827 = shalt.err (!%p6824_p12)
}
 0xb0e   :  { %s7737_s25 = sld [smem:[#allocation44_spill]] }
 0xb14   :  { %s6828_s23 = scalar_lea.hbm %s7737_s25, 256 }
 0xb15   :  { %p6829_p13 = scmp.ne.s32.totalorder %s7737_s25, %s6828_s23  ;;  %p6832_p0 = scmp.lt.u32.totalorder %s6828_s23, %s7737_s25 }
 0xb17   :  { %p6834_p1 = pnand %p6832_p0, %p6829_p13 }
 0xb19   :  { %6837 = shalt.err (!%p6834_p1)
}
 0xb1a   :  { %4597 = dma.vmem_to_hbm [thread:$0]  %s4592_s3, 256, %s7737_s25, [#allocation4], %s6859_s5, %s6859_s5, %s6860_s28  }
 0xb1b   :  { %6854 = dma.done.wait [#allocation4], 256  }
 0xb1c   :  { %6855 = vsyncadd [#allocation4], 4294967040 }
 0xb1d   :  { %4601 = vsyncpa [#allocation3], 1 }
 0xb1e   :  { %4602 = vsyncpa [#allocation6], 1 }
 0xb1f   :  { %4603 = vsyncpa [#allocation9], 1 }
 0xb20   :  { %4604 = vsyncpa [#allocation12], 1 }
 0xb21   :  { %4605 = vsyncpa [#allocation15], 1 }
 0xb22   :  { %4606 = vsyncpa [#allocation18], 1 }
 0xb23   :  { %4607 = vsyncpa [#allocation21], 1 }
 0xb24   :  { %4608 = vsyncpa [#allocation24], 1 }
 0xb25   :  { %4609 = vsyncpa [#allocation4], 1 }

</bundles_post_ra>
